<compile_context>
chip_gen: v6e
topology: v6e:2x2x1
jax: 0.10.0
libtpu: 0.0.40
codegen_flags: <defaults>
</compile_context>

<pallas_src>
import math

import jax
import jax.numpy as jnp
from jax.experimental import pallas as pl
from jax.experimental.pallas import tpu as pltpu

_LN_EPS = 1e-5
_INV_SQRT2 = 1.0 / math.sqrt(2.0)


# ----------------------------- tiling helpers --------------------------------


def _sublane(dtype):
    """Minimum sublane (second-to-last block dim) alignment for a dtype."""
    return max(8, 32 // jnp.dtype(dtype).itemsize)   # f32:8, bf16:16, int8:32


def _pick_tile(dim, target, align):
    """Largest `align`-aligned divisor of `dim` that is <= target, else the
    full dim (a full dim is always a legal block extent)."""
    if dim <= target:
        return dim
    t = (target // align) * align
    while t >= align:
        if dim % t == 0:
            return t
        t -= align
    return dim


def _layer_norm_f32(x, g, b):
    mean = jnp.mean(x, axis=-1, keepdims=True)
    var = jnp.mean(jnp.square(x - mean), axis=-1, keepdims=True)
    return (x - mean) * jax.lax.rsqrt(var + _LN_EPS) * g + b


# ----------------------------- Pallas kernels --------------------------------


def _ln_qkv_heads_kernel(x_ref, g_ref, b_ref, wq_ref, wk_ref, wv_ref,
                         q_ref, k_ref, v_ref, xn_ref):
    # LayerNorm computed once per (batch, row-tile) and cached in VMEM across
    # the heads axis (innermost grid axis); reused for q, k and v projections.
    @pl.when(pl.program_id(2) == 0)
    def _ln():
        x = x_ref[0].astype(jnp.float32)
        xn = _layer_norm_f32(x, g_ref[...].astype(jnp.float32),
                             b_ref[...].astype(jnp.float32))
        xn_ref[...] = xn.astype(xn_ref.dtype)

    xn = xn_ref[...]
    q_ref[0] = jnp.dot(xn, wq_ref[0],
                       preferred_element_type=jnp.float32).astype(q_ref.dtype)
    k_ref[0] = jnp.dot(xn, wk_ref[0],
                       preferred_element_type=jnp.float32).astype(k_ref.dtype)
    v_ref[0] = jnp.dot(xn, wv_ref[0],
                       preferred_element_type=jnp.float32).astype(v_ref.dtype)


def _ln_q_heads_kernel(x_ref, g_ref, b_ref, wq_ref, q_ref, xn_ref):
    @pl.when(pl.program_id(2) == 0)
    def _ln():
        x = x_ref[0].astype(jnp.float32)
        xn = _layer_norm_f32(x, g_ref[...].astype(jnp.float32),
                             b_ref[...].astype(jnp.float32))
        xn_ref[...] = xn.astype(xn_ref.dtype)

    q_ref[0] = jnp.dot(xn_ref[...], wq_ref[0],
                       preferred_element_type=jnp.float32).astype(q_ref.dtype)


def _kv_heads_kernel(c_ref, wk_ref, wv_ref, k_ref, v_ref):
    # K/V projections from (un-normalized) context, written head-split.
    c = c_ref[0]
    k_ref[0] = jnp.dot(c, wk_ref[0],
                       preferred_element_type=jnp.float32).astype(k_ref.dtype)
    v_ref[0] = jnp.dot(c, wv_ref[0],
                       preferred_element_type=jnp.float32).astype(v_ref.dtype)


def _flash_attn_kernel(q_ref, k_ref, v_ref, o_ref, m_ref, l_ref, acc_ref):
    kv = pl.program_id(2)

    @pl.when(kv == 0)
    def _init():
        m_ref[...] = jnp.full_like(m_ref, -jnp.inf)
        l_ref[...] = jnp.zeros_like(l_ref)
        acc_ref[...] = jnp.zeros_like(acc_ref)

    # softmax scale is pre-folded into the q projection weights; contract last
    # dims directly (q @ k^T without an explicit transpose).
    s = jax.lax.dot_general(q_ref[0], k_ref[0], (((1,), (1,)), ((), ())),
                            preferred_element_type=jnp.float32)   # (tq, tkv)
    m_prev = m_ref[...]
    m_new = jnp.maximum(m_prev, jnp.max(s, axis=-1, keepdims=True))
    alpha = jnp.exp(m_prev - m_new)
    p = jnp.exp(s - m_new)
    l_ref[...] = alpha * l_ref[...] + jnp.sum(p, axis=-1, keepdims=True)
    acc_ref[...] = alpha * acc_ref[...] + jnp.dot(
        p.astype(v_ref.dtype), v_ref[0], preferred_element_type=jnp.float32)
    m_ref[...] = m_new

    @pl.when(kv == pl.num_programs(2) - 1)
    def _done():
        # exact division, executed once per q tile (negligible cost).
        o_ref[0] = (acc_ref[...] / l_ref[...]).astype(o_ref.dtype)


def _attn_out_kernel(x_ref, w_ref, b_ref, r_ref, o_ref, acc_ref):
    # Output projection with the head merge folded in: heads is the reduction
    # grid axis, per-head (tm, d_head) x (d_head, D) partial products are
    # accumulated in a f32 VMEM scratch; bias + residual fused in the epilogue.
    h = pl.program_id(2)

    @pl.when(h == 0)
    def _init():
        acc_ref[...] = jnp.zeros_like(acc_ref)

    acc_ref[...] += jnp.dot(x_ref[0], w_ref[0],
                            preferred_element_type=jnp.float32)

    @pl.when(h == pl.num_programs(2) - 1)
    def _done():
        o_ref[0] = (acc_ref[...] + b_ref[...].astype(jnp.float32)
                    + r_ref[0].astype(jnp.float32)).astype(o_ref.dtype)


def _ln_geglu_kernel(x_ref, g_ref, b_ref, wa_ref, wb_ref, ba_ref, bb_ref,
                     o_ref, xn_ref):
    # LayerNorm cached across output-column tiles (innermost grid axis), then
    # value/gate projections + exact (erf) GELU gating fused in one kernel.
    @pl.when(pl.program_id(1) == 0)
    def _ln():
        x = x_ref[...].astype(jnp.float32)
        xn = _layer_norm_f32(x, g_ref[...].astype(jnp.float32),
                             b_ref[...].astype(jnp.float32))
        xn_ref[...] = xn.astype(xn_ref.dtype)

    xn = xn_ref[...]
    a = jnp.dot(xn, wa_ref[...], preferred_element_type=jnp.float32)
    a = a + ba_ref[...].astype(jnp.float32)
    gt = jnp.dot(xn, wb_ref[...], preferred_element_type=jnp.float32)
    gt = gt + bb_ref[...].astype(jnp.float32)
    gelu = 0.5 * gt * (1.0 + jax.lax.erf(gt * _INV_SQRT2))
    o_ref[...] = (a * gelu).astype(o_ref.dtype)


def _matmul_bias_res_kernel(x_ref, w_ref, b_ref, r_ref, o_ref, acc_ref):
    k = pl.program_id(2)

    @pl.when(k == 0)
    def _init():
        acc_ref[...] = jnp.zeros_like(acc_ref)

    acc_ref[...] += jnp.dot(x_ref[...], w_ref[...],
                            preferred_element_type=jnp.float32)

    @pl.when(k == pl.num_programs(2) - 1)
    def _done():
        o_ref[...] = (acc_ref[...] + b_ref[...].astype(jnp.float32)
                      + r_ref[...].astype(jnp.float32)).astype(o_ref.dtype)


# ----------------------------- Pallas wrappers -------------------------------


def ln_qkv_heads(x, gamma, beta, wq_h, wk_h, wv_h, *, tr=256):
    B, N, D = x.shape
    H, _, d = wq_h.shape
    tr = _pick_tile(N, tr, _sublane(x.dtype))
    out_sds = jax.ShapeDtypeStruct((B * H, N, d), x.dtype)
    w_spec = pl.BlockSpec((1, D, d), lambda b, i, h: (h, 0, 0))
    o_spec = pl.BlockSpec((1, tr, d), lambda b, i, h: (b * H + h, i, 0))
    return pl.pallas_call(
        _ln_qkv_heads_kernel,
        out_shape=(out_sds, out_sds, out_sds),
        grid=(B, N // tr, H),
        in_specs=[
            pl.BlockSpec((1, tr, D), lambda b, i, h: (b, i, 0)),
            pl.BlockSpec((1, D), lambda b, i, h: (0, 0)),
            pl.BlockSpec((1, D), lambda b, i, h: (0, 0)),
            w_spec, w_spec, w_spec,
        ],
        out_specs=(o_spec, o_spec, o_spec),
        scratch_shapes=[pltpu.VMEM((tr, D), x.dtype)],
        compiler_params=pltpu.CompilerParams(
            dimension_semantics=("parallel", "parallel", "arbitrary")),
    )(x, gamma, beta, wq_h, wk_h, wv_h)


def ln_q_heads(x, gamma, beta, wq_h, *, tr=256):
    B, N, D = x.shape
    H, _, d = wq_h.shape
    tr = _pick_tile(N, tr, _sublane(x.dtype))
    return pl.pallas_call(
        _ln_q_heads_kernel,
        out_shape=jax.ShapeDtypeStruct((B * H, N, d), x.dtype),
        grid=(B, N // tr, H),
        in_specs=[
            pl.BlockSpec((1, tr, D), lambda b, i, h: (b, i, 0)),
            pl.BlockSpec((1, D), lambda b, i, h: (0, 0)),
            pl.BlockSpec((1, D), lambda b, i, h: (0, 0)),
            pl.BlockSpec((1, D, d), lambda b, i, h: (h, 0, 0)),
        ],
        out_specs=pl.BlockSpec((1, tr, d), lambda b, i, h: (b * H + h, i, 0)),
        scratch_shapes=[pltpu.VMEM((tr, D), x.dtype)],
        compiler_params=pltpu.CompilerParams(
            dimension_semantics=("parallel", "parallel", "arbitrary")),
    )(x, gamma, beta, wq_h)


def kv_heads(ctx, wk_h, wv_h, *, tr=256):
    B, M, Dc = ctx.shape
    H, _, d = wk_h.shape
    tr = _pick_tile(M, tr, _sublane(ctx.dtype))
    out_sds = jax.ShapeDtypeStruct((B * H, M, d), ctx.dtype)
    w_spec = pl.BlockSpec((1, Dc, d), lambda b, i, h: (h, 0, 0))
    o_spec = pl.BlockSpec((1, tr, d), lambda b, i, h: (b * H + h, i, 0))
    return pl.pallas_call(
        _kv_heads_kernel,
        out_shape=(out_sds, out_sds),
        grid=(B, M // tr, H),
        in_specs=[pl.BlockSpec((1, tr, Dc), lambda b, i, h: (b, i, 0)),
                  w_spec, w_spec],
        out_specs=(o_spec, o_spec),
        compiler_params=pltpu.CompilerParams(
            dimension_semantics=("parallel", "parallel", "parallel")),
    )(ctx, wk_h, wv_h)


def flash_attention(q, k, v, *, tq=256, tkv=256):
    BH, Nq, d = q.shape
    Nk = k.shape[1]
    tq = _pick_tile(Nq, tq, _sublane(q.dtype))
    tkv = _pick_tile(Nk, tkv, 128)   # lane-aligned score tiles when possible
    return pl.pallas_call(
        _flash_attn_kernel,
        out_shape=jax.ShapeDtypeStruct((BH, Nq, d), q.dtype),
        grid=(BH, Nq // tq, Nk // tkv),
        in_specs=[
            pl.BlockSpec((1, tq, d), lambda b, qi, ki: (b, qi, 0)),
            pl.BlockSpec((1, tkv, d), lambda b, qi, ki: (b, ki, 0)),
            pl.BlockSpec((1, tkv, d), lambda b, qi, ki: (b, ki, 0)),
        ],
        out_specs=pl.BlockSpec((1, tq, d), lambda b, qi, ki: (b, qi, 0)),
        scratch_shapes=[
            pltpu.VMEM((tq, 1), jnp.float32),   # running max
            pltpu.VMEM((tq, 1), jnp.float32),   # running denominator
            pltpu.VMEM((tq, d), jnp.float32),   # running numerator
        ],
        compiler_params=pltpu.CompilerParams(
            dimension_semantics=("parallel", "parallel", "arbitrary")),
    )(q, k, v)


def attn_out_proj(o_heads, wo_h, bo, residual, *, tr=256):
    BH, N, d = o_heads.shape
    H, _, D = wo_h.shape
    B = BH // H
    tr = _pick_tile(N, tr, _sublane(o_heads.dtype))
    return pl.pallas_call(
        _attn_out_kernel,
        out_shape=jax.ShapeDtypeStruct((B, N, D), residual.dtype),
        grid=(B, N // tr, H),
        in_specs=[
            pl.BlockSpec((1, tr, d), lambda b, i, h: (b * H + h, i, 0)),
            pl.BlockSpec((1, d, D), lambda b, i, h: (h, 0, 0)),
            pl.BlockSpec((1, D), lambda b, i, h: (0, 0)),
            pl.BlockSpec((1, tr, D), lambda b, i, h: (b, i, 0)),
        ],
        out_specs=pl.BlockSpec((1, tr, D), lambda b, i, h: (b, i, 0)),
        scratch_shapes=[pltpu.VMEM((tr, D), jnp.float32)],
        compiler_params=pltpu.CompilerParams(
            dimension_semantics=("parallel", "parallel", "arbitrary")),
    )(o_heads, wo_h, bo, residual)


def ln_geglu(x2d, gamma, beta, wa, wb, ba, bb, *, tm=256, tn=512):
    M, D = x2d.shape
    F = wa.shape[1]
    tm = _pick_tile(M, tm, _sublane(x2d.dtype))
    tn = _pick_tile(F, tn, 128)
    return pl.pallas_call(
        _ln_geglu_kernel,
        out_shape=jax.ShapeDtypeStruct((M, F), x2d.dtype),
        grid=(M // tm, F // tn),
        in_specs=[
            pl.BlockSpec((tm, D), lambda i, j: (i, 0)),
            pl.BlockSpec((1, D), lambda i, j: (0, 0)),
            pl.BlockSpec((1, D), lambda i, j: (0, 0)),
            pl.BlockSpec((D, tn), lambda i, j: (0, j)),
            pl.BlockSpec((D, tn), lambda i, j: (0, j)),
            pl.BlockSpec((1, tn), lambda i, j: (0, j)),
            pl.BlockSpec((1, tn), lambda i, j: (0, j)),
        ],
        out_specs=pl.BlockSpec((tm, tn), lambda i, j: (i, j)),
        scratch_shapes=[pltpu.VMEM((tm, D), x2d.dtype)],
        compiler_params=pltpu.CompilerParams(
            dimension_semantics=("parallel", "arbitrary")),
    )(x2d, gamma, beta, wa, wb, ba, bb)


def matmul_bias_residual(x2d, w, bias, residual, *, tm=256, tn=256, tk=512):
    M, K = x2d.shape
    N = w.shape[1]
    tm = _pick_tile(M, tm, _sublane(x2d.dtype))
    tn = _pick_tile(N, tn, 128)
    tk = _pick_tile(K, tk, 128)
    return pl.pallas_call(
        _matmul_bias_res_kernel,
        out_shape=jax.ShapeDtypeStruct((M, N), residual.dtype),
        grid=(M // tm, N // tn, K // tk),
        in_specs=[
            pl.BlockSpec((tm, tk), lambda i, j, k: (i, k)),
            pl.BlockSpec((tk, tn), lambda i, j, k: (k, j)),
            pl.BlockSpec((1, tn), lambda i, j, k: (0, j)),
            pl.BlockSpec((tm, tn), lambda i, j, k: (i, j)),
        ],
        out_specs=pl.BlockSpec((tm, tn), lambda i, j, k: (i, j)),
        scratch_shapes=[pltpu.VMEM((tm, tn), jnp.float32)],
        compiler_params=pltpu.CompilerParams(
            dimension_semantics=("parallel", "parallel", "arbitrary")),
    )(x2d, w, bias, residual)


# ---------------------------- parameter preparation --------------------------


def prepare_params(params, heads):
    """One-time parameter preparation (run OUTSIDE jit): per-head weight
    layouts for the projection kernels, softmax scale folded into wq, GEGLU
    w1/b1 pre-split, biases as (1, N) rows.  No per-forward weight copies."""
    def heads_in(w):     # (D_in, H*d) -> (H, D_in, d)
        D_in, inner = w.shape
        d = inner // heads
        return jnp.transpose(w.reshape(D_in, heads, d), (1, 0, 2))

    def heads_out(w):    # (H*d, D_out) -> (H, d, D_out)
        inner, D_out = w.shape
        return w.reshape(heads, inner // heads, D_out)

    def attn(p):
        d = p["wq"].shape[1] // heads
        return {
            "wq_h": heads_in(p["wq"] * (d ** -0.5)),   # scale folded into q
            "wk_h": heads_in(p["wk"]),
            "wv_h": heads_in(p["wv"]),
            "wo_h": heads_out(p["wo"]),
            "bo": p["bo"].reshape(1, -1),
        }

    ff = params["ff"]
    F = ff["w2"].shape[0]
    row = lambda v: v.reshape(1, -1)
    return {
        "ln1_g": row(params["ln1_g"]), "ln1_b": row(params["ln1_b"]),
        "ln2_g": row(params["ln2_g"]), "ln2_b": row(params["ln2_b"]),
        "ln3_g": row(params["ln3_g"]), "ln3_b": row(params["ln3_b"]),
        "attn1": attn(params["attn1"]),
        "attn2": attn(params["attn2"]),
        "ff": {"wa": ff["w1"][:, :F], "wb": ff["w1"][:, F:],
               "ba": row(ff["b1"][:F]), "bb": row(ff["b1"][F:]),
               "w2": ff["w2"], "b2": row(ff["b2"])},
    }


# ------------------------------ module forward -------------------------------


def cross_attention(x, context, ln_g, ln_b, p):
    """to_out(attn(LN(x), ctx)) + x; residual/bias fused into the epilogue.
    Self-attention (context is None) uses LN(x) for q, k and v (as torch)."""
    if context is None:
        q, k, v = ln_qkv_heads(x, ln_g, ln_b, p["wq_h"], p["wk_h"], p["wv_h"])
    else:
        q = ln_q_heads(x, ln_g, ln_b, p["wq_h"])
        k, v = kv_heads(context, p["wk_h"], p["wv_h"])
    # TODO(synk): optional attention mask path of the torch module is not
    # implemented (module is exercised with mask=None); dropout p=0 is identity.
    o = flash_attention(q, k, v)                       # (B*heads, N, d_head)
    return attn_out_proj(o, p["wo_h"], p["bo"], x)     # heads merged in-kernel


def feed_forward(x, ln_g, ln_b, p):
    B, N, D = x.shape
    x2d = x.reshape(B * N, D)                          # free reshape
    g = ln_geglu(x2d, ln_g, ln_b, p["wa"], p["wb"], p["ba"], p["bb"])
    out = matmul_bias_residual(g, p["w2"], p["b2"], x2d)
    return out.reshape(B, N, D)


def basic_transformer_block(x, context, params):
    x = cross_attention(x, None, params["ln1_g"], params["ln1_b"], params["attn1"])
    x = cross_attention(x, context, params["ln2_g"], params["ln2_b"], params["attn2"])
    x = feed_forward(x, params["ln3_g"], params["ln3_b"], params["ff"])
    return x


# ------------------------- pure-JAX reference check ---------------------------


def _ref_block(x, context, params, heads):
    def ln(t, g, b):
        m = t.mean(-1, keepdims=True)
        v = ((t - m) ** 2).mean(-1, keepdims=True)
        return (t - m) / jnp.sqrt(v + _LN_EPS) * g + b

    def attn(xq, ctx, p):
        B, N, _ = xq.shape
        _, M, _ = ctx.shape
        inner = p["wq"].shape[1]
        d = inner // heads
        q = xq @ p["wq"]
        k = ctx @ p["wk"]
        v = ctx @ p["wv"]

        def sh(t, L):
            return t.reshape(B, L, heads, d).transpose(0, 2, 1, 3)

        qh, kh, vh = sh(q, N), sh(k, M), sh(v, M)
        s = jnp.einsum("bhid,bhjd->bhij", qh, kh) * (d ** -0.5)
        a = jax.nn.softmax(s, axis=-1)
        o = jnp.einsum("bhij,bhjd->bhid", a, vh)
        o = o.transpose(0, 2, 1, 3).reshape(B, N, inner)
        return o @ p["wo"] + p["bo"]

    def ff(t, p):
        h = t @ p["w1"] + p["b1"]
        F = p["w2"].shape[0]
        a, gate = h[..., :F], h[..., F:]
        g = 0.5 * gate * (1.0 + jax.lax.erf(gate / math.sqrt(2.0)))
        return (a * g) @ p["w2"] + p["b2"]

    # torch: attn1(norm1(x)) -> context defaults to the *normalized* input.
    xn1 = ln(x, params["ln1_g"], params["ln1_b"])
    x = attn(xn1, xn1, params["attn1"]) + x
    xn2 = ln(x, params["ln2_g"], params["ln2_b"])
    x = attn(xn2, context, params["attn2"]) + x
    x = ff(ln(x, params["ln3_g"], params["ln3_b"]), params["ff"]) + x
    return x


# ---------------------------------- main --------------------------------------

if __name__ == "__main__":
    B, N, M = 2, 16, 8           # batch, query tokens, context tokens
    dim = 32
    n_heads, d_head = 4, 8       # inner_dim = 32
    context_dim = 32
    inner_dim = n_heads * d_head
    ff_inner = 4 * dim           # 128

    key = jax.random.PRNGKey(0)
    keys = jax.random.split(key, 16)

    def w(k, shape, s=0.02):
        return jax.random.normal(k, shape, jnp.float32) * s

    def attn_params(kq, kk, kv, ko, kb, q_dim, c_dim):
        return {
            "wq": w(kq, (q_dim, inner_dim)),
            "wk": w(kk, (c_dim, inner_dim)),
            "wv": w(kv, (c_dim, inner_dim)),
            "wo": w(ko, (inner_dim, q_dim)),
            "bo": w(kb, (q_dim,)),
        }

    params = {
        "ln1_g": jnp.ones((dim,), jnp.float32),
        "ln1_b": jnp.zeros((dim,), jnp.float32),
        "ln2_g": jnp.ones((dim,), jnp.float32),
        "ln2_b": jnp.zeros((dim,), jnp.float32),
        "ln3_g": jnp.ones((dim,), jnp.float32),
        "ln3_b": jnp.zeros((dim,), jnp.float32),
        "attn1": attn_params(keys[0], keys[1], keys[2], keys[3], keys[14], dim, dim),
        "attn2": attn_params(keys[4], keys[5], keys[6], keys[7], keys[15], dim, context_dim),
        "ff": {
            "w1": w(keys[8], (dim, 2 * ff_inner)),
            "b1": w(keys[9], (2 * ff_inner,)),
            "w2": w(keys[10], (ff_inner, dim)),
            "b2": w(keys[11], (dim,)),
        },
    }

    x = jax.random.normal(keys[12], (B, N, dim), jnp.float32)
    context = jax.random.normal(keys[13], (B, M, context_dim), jnp.float32)

    # one-time, outside-jit weight re-layout (head split, scale fold, w1 split)
    prep = prepare_params(params, n_heads)

    fwd = jax.jit(basic_transformer_block)
    out = jax.block_until_ready(fwd(x, context, prep))

    # exact-f32 reference (precision scoped to the check only; the kernels run
    # the native MXU path with f32 accumulation).
    with jax.default_matmul_precision("highest"):
        ref = _ref_block(x, context, params, n_heads)

    err = float(jnp.max(jnp.abs(out - ref)))
    assert out.shape == (B, N, dim)
    assert jnp.allclose(out, ref, atol=5e-3, rtol=5e-3), (
        f"mismatch vs reference (max abs err {err})")

    print("KERNEL_OK")
</pallas_src>

<mosaic_0001>
module attributes {stable_mosaic.version = 11 : i64} {
  func.func @_flash_attn_kernel(%arg0: i32, %arg1: i32, %arg2: i32, %arg3: memref<1x16x8xf32, #tpu.memory_space<vmem>>, %arg4: memref<1x16x8xf32, #tpu.memory_space<vmem>>, %arg5: memref<1x16x8xf32, #tpu.memory_space<vmem>>, %arg6: memref<1x16x8xf32, #tpu.memory_space<vmem>>, %arg7: memref<16x1xf32, #tpu.memory_space<vmem>>, %arg8: memref<16x1xf32, #tpu.memory_space<vmem>>, %arg9: memref<16x8xf32, #tpu.memory_space<vmem>>) attributes {dimension_semantics = [#tpu.dimension_semantics<parallel>, #tpu.dimension_semantics<parallel>, #tpu.dimension_semantics<arbitrary>], iteration_bounds = array<i64: 8, 1, 1>, scalar_prefetch = 0 : i64, scratch_operands = 3 : i64, tpu.core_type = #tpu.core_type<tc>, window_params = [{transform_indices = @transform_0, window_bounds = array<i64: 1, 16, 8>}, {transform_indices = @transform_1, window_bounds = array<i64: 1, 16, 8>}, {transform_indices = @transform_2, window_bounds = array<i64: 1, 16, 8>}, {transform_indices = @transform_3, window_bounds = array<i64: 1, 16, 8>}]} {
    %c0_i32 = arith.constant 0 : i32
    %0 = arith.cmpi eq, %arg2, %c0_i32 : i32
    %1 = arith.extui %0 : i1 to i32
    %c0_i32_0 = arith.constant 0 : i32
    %2 = arith.cmpi ne, %1, %c0_i32_0 : i32
    scf.if %2 {
      %cst_26 = arith.constant 0xFF800000 : f32
      %35 = vector.broadcast %cst_26 : f32 to vector<16x1xf32>
      %c0_27 = arith.constant 0 : index
      %c0_28 = arith.constant 0 : index
      %36 = vector.load %arg7[%c0_27, %c0_28] : memref<16x1xf32, #tpu.memory_space<vmem>>, vector<16x1xf32>
      tpu.vector_store %arg7[%c0_27, %c0_28], %35 {strides = array<i32>} : memref<16x1xf32, #tpu.memory_space<vmem>>, vector<16x1xf32>,
      %cst_29 = arith.constant 0.000000e+00 : f32
      %37 = vector.broadcast %cst_29 : f32 to vector<16x1xf32>
      %c0_30 = arith.constant 0 : index
      %c0_31 = arith.constant 0 : index
      %38 = vector.load %arg8[%c0_30, %c0_31] : memref<16x1xf32, #tpu.memory_space<vmem>>, vector<16x1xf32>
      tpu.vector_store %arg8[%c0_30, %c0_31], %37 {strides = array<i32>} : memref<16x1xf32, #tpu.memory_space<vmem>>, vector<16x1xf32>,
      %cst_32 = arith.constant 0.000000e+00 : f32
      %39 = vector.broadcast %cst_32 : f32 to vector<16x8xf32>
      %c0_33 = arith.constant 0 : index
      %c0_34 = arith.constant 0 : index
      %40 = vector.load %arg9[%c0_33, %c0_34] : memref<16x8xf32, #tpu.memory_space<vmem>>, vector<16x8xf32>
      tpu.vector_store %arg9[%c0_33, %c0_34], %39 {strides = array<i32>} : memref<16x8xf32, #tpu.memory_space<vmem>>, vector<16x8xf32>,
    } else {
    }
    %c0 = arith.constant 0 : index
    %c0_1 = arith.constant 0 : index
    %c0_2 = arith.constant 0 : index
    %3 = vector.load %arg3[%c0, %c0_1, %c0_2] : memref<1x16x8xf32, #tpu.memory_space<vmem>>, vector<1x16x8xf32>
    %4 = vector.shape_cast %3 : vector<1x16x8xf32> to vector<16x8xf32>
    %c0_3 = arith.constant 0 : index
    %c0_4 = arith.constant 0 : index
    %c0_5 = arith.constant 0 : index
    %5 = vector.load %arg4[%c0_3, %c0_4, %c0_5] : memref<1x16x8xf32, #tpu.memory_space<vmem>>, vector<1x16x8xf32>
    %6 = vector.shape_cast %5 : vector<1x16x8xf32> to vector<16x8xf32>
    %cst = arith.constant dense<0.000000e+00> : vector<16x16xf32>
    %7 = tpu.matmul %4, %6, %cst {dimension_numbers = #tpu.dot_dimension_numbers<[1], [1], [0], [0], [0, 0, 1, 0], [], []>} : vector<16x8xf32>, vector<16x8xf32>, vector<16x16xf32> -> vector<16x16xf32>
    %c0_6 = arith.constant 0 : index
    %c0_7 = arith.constant 0 : index
    %8 = vector.load %arg7[%c0_6, %c0_7] : memref<16x1xf32, #tpu.memory_space<vmem>>, vector<16x1xf32>
    %cst_8 = arith.constant dense<0xFF800000> : vector<16xf32>
    %9 = vector.multi_reduction <maximumf>, %7, %cst_8 [1] : vector<16x16xf32> to vector<16xf32>
    %10 = vector.shape_cast %9 : vector<16xf32> to vector<16x1xf32>
    %11 = arith.maximumf %8, %10 : vector<16x1xf32>
    %12 = arith.subf %8, %11 : vector<16x1xf32>
    %13 = math.exp %12 : vector<16x1xf32>
    %14 = vector.broadcast %11 : vector<16x1xf32> to vector<16x16xf32>
    %15 = arith.subf %7, %14 : vector<16x16xf32>
    %16 = math.exp %15 : vector<16x16xf32>
    %c0_9 = arith.constant 0 : index
    %c0_10 = arith.constant 0 : index
    %17 = vector.load %arg8[%c0_9, %c0_10] : memref<16x1xf32, #tpu.memory_space<vmem>>, vector<16x1xf32>
    %18 = arith.mulf %13, %17 : vector<16x1xf32>
    %cst_11 = arith.constant dense<0.000000e+00> : vector<16xf32>
    %19 = vector.multi_reduction <add>, %16, %cst_11 [1] : vector<16x16xf32> to vector<16xf32>
    %20 = vector.shape_cast %19 : vector<16xf32> to vector<16x1xf32>
    %21 = arith.addf %18, %20 : vector<16x1xf32>
    %c0_12 = arith.constant 0 : index
    %c0_13 = arith.constant 0 : index
    %22 = vector.load %arg8[%c0_12, %c0_13] : memref<16x1xf32, #tpu.memory_space<vmem>>, vector<16x1xf32>
    tpu.vector_store %arg8[%c0_12, %c0_13], %21 {strides = array<i32>} : memref<16x1xf32, #tpu.memory_space<vmem>>, vector<16x1xf32>,
    %c0_14 = arith.constant 0 : index
    %c0_15 = arith.constant 0 : index
    %23 = vector.load %arg9[%c0_14, %c0_15] : memref<16x8xf32, #tpu.memory_space<vmem>>, vector<16x8xf32>
    %24 = vector.broadcast %13 : vector<16x1xf32> to vector<16x8xf32>
    %25 = arith.mulf %24, %23 : vector<16x8xf32>
    %c0_16 = arith.constant 0 : index
    %c0_17 = arith.constant 0 : index
    %c0_18 = arith.constant 0 : index
    %26 = vector.load %arg5[%c0_16, %c0_17, %c0_18] : memref<1x16x8xf32, #tpu.memory_space<vmem>>, vector<1x16x8xf32>
    %27 = vector.shape_cast %26 : vector<1x16x8xf32> to vector<16x8xf32>
    %cst_19 = arith.constant dense<0.000000e+00> : vector<16x8xf32>
    %28 = tpu.matmul %16, %27, %cst_19 {dimension_numbers = #tpu.dot_dimension_numbers<[1], [0], [0], [1], [0, 0, 1, 1], [], []>} : vector<16x16xf32>, vector<16x8xf32>, vector<16x8xf32> -> vector<16x8xf32>
    %29 = arith.addf %25, %28 : vector<16x8xf32>
    %c0_20 = arith.constant 0 : index
    %c0_21 = arith.constant 0 : index
    %30 = vector.load %arg9[%c0_20, %c0_21] : memref<16x8xf32, #tpu.memory_space<vmem>>, vector<16x8xf32>
    tpu.vector_store %arg9[%c0_20, %c0_21], %29 {strides = array<i32>} : memref<16x8xf32, #tpu.memory_space<vmem>>, vector<16x8xf32>,
    %c0_22 = arith.constant 0 : index
    %c0_23 = arith.constant 0 : index
    %31 = vector.load %arg7[%c0_22, %c0_23] : memref<16x1xf32, #tpu.memory_space<vmem>>, vector<16x1xf32>
    tpu.vector_store %arg7[%c0_22, %c0_23], %11 {strides = array<i32>} : memref<16x1xf32, #tpu.memory_space<vmem>>, vector<16x1xf32>,
    %c0_i32_24 = arith.constant 0 : i32
    %32 = arith.cmpi eq, %arg2, %c0_i32_24 : i32
    %33 = arith.extui %32 : i1 to i32
    %c0_i32_25 = arith.constant 0 : i32
    %34 = arith.cmpi ne, %33, %c0_i32_25 : i32
    scf.if %34 {
      %c0_26 = arith.constant 0 : index
      %c0_27 = arith.constant 0 : index
      %35 = vector.load %arg9[%c0_26, %c0_27] : memref<16x8xf32, #tpu.memory_space<vmem>>, vector<16x8xf32>
      %c0_28 = arith.constant 0 : index
      %c0_29 = arith.constant 0 : index
      %36 = vector.load %arg8[%c0_28, %c0_29] : memref<16x1xf32, #tpu.memory_space<vmem>>, vector<16x1xf32>
      %37 = vector.broadcast %36 : vector<16x1xf32> to vector<16x8xf32>
      %38 = arith.divf %35, %37 : vector<16x8xf32>
      %c0_30 = arith.constant 0 : index
      %c0_31 = arith.constant 0 : index
      %c0_32 = arith.constant 0 : index
      %39 = vector.load %arg6[%c0_30, %c0_31, %c0_32] : memref<1x16x8xf32, #tpu.memory_space<vmem>>, vector<1x16x8xf32>
      %40 = vector.shape_cast %39 : vector<1x16x8xf32> to vector<16x8xf32>
      %41 = vector.shape_cast %38 : vector<16x8xf32> to vector<1x16x8xf32>
      tpu.vector_store %arg6[%c0_30, %c0_31, %c0_32], %41 {strides = array<i32>} : memref<1x16x8xf32, #tpu.memory_space<vmem>>, vector<1x16x8xf32>,
    } else {
    }
    return
  }
  func.func @transform_0(%arg0: i32, %arg1: i32, %arg2: i32) -> (i32, i32, i32) {
    %c0_i32 = arith.constant 0 : i32
    %c0_i32_0 = arith.constant 0 : i32
    return %arg0, %arg1, %c0_i32 : i32, i32, i32
  }
  func.func @transform_1(%arg0: i32, %arg1: i32, %arg2: i32) -> (i32, i32, i32) {
    %c0_i32 = arith.constant 0 : i32
    %c0_i32_0 = arith.constant 0 : i32
    return %arg0, %arg2, %c0_i32 : i32, i32, i32
  }
  func.func @transform_2(%arg0: i32, %arg1: i32, %arg2: i32) -> (i32, i32, i32) {
    %c0_i32 = arith.constant 0 : i32
    %c0_i32_0 = arith.constant 0 : i32
    return %arg0, %arg2, %c0_i32 : i32, i32, i32
  }
  func.func @transform_3(%arg0: i32, %arg1: i32, %arg2: i32) -> (i32, i32, i32) {
    %c0_i32 = arith.constant 0 : i32
    %c0_i32_0 = arith.constant 0 : i32
    return %arg0, %arg1, %c0_i32 : i32, i32, i32
  }
}

module attributes {stable_mosaic.version = 11 : i64} {
  func.func @_ln_qkv_heads_kernel(%arg0: i32, %arg1: i32, %arg2: i32, %arg3: memref<1x16x32xf32, #tpu.memory_space<vmem>>, %arg4: memref<1x32xf32, #tpu.memory_space<vmem>>, %arg5: memref<1x32xf32, #tpu.memory_space<vmem>>, %arg6: memref<1x32x8xf32, #tpu.memory_space<vmem>>, %arg7: memref<1x32x8xf32, #tpu.memory_space<vmem>>, %arg8: memref<1x32x8xf32, #tpu.memory_space<vmem>>, %arg9: memref<1x16x8xf32, #tpu.memory_space<vmem>>, %arg10: memref<1x16x8xf32, #tpu.memory_space<vmem>>, %arg11: memref<1x16x8xf32, #tpu.memory_space<vmem>>, %arg12: memref<16x32xf32, #tpu.memory_space<vmem>>) attributes {dimension_semantics = [#tpu.dimension_semantics<parallel>, #tpu.dimension_semantics<parallel>, #tpu.dimension_semantics<arbitrary>], iteration_bounds = array<i64: 2, 1, 4>, scalar_prefetch = 0 : i64, scratch_operands = 1 : i64, tpu.core_type = #tpu.core_type<tc>, window_params = [{transform_indices = @transform_0, window_bounds = array<i64: 1, 16, 32>}, {pipeline_mode = #tpu.pipeline_mode<synchronous>, transform_indices = @transform_1, window_bounds = array<i64: 1, 32>}, {pipeline_mode = #tpu.pipeline_mode<synchronous>, transform_indices = @transform_2, window_bounds = array<i64: 1, 32>}, {transform_indices = @transform_3, window_bounds = array<i64: 1, 32, 8>}, {transform_indices = @transform_4, window_bounds = array<i64: 1, 32, 8>}, {transform_indices = @transform_5, window_bounds = array<i64: 1, 32, 8>}, {transform_indices = @transform_6, window_bounds = array<i64: 1, 16, 8>}, {transform_indices = @transform_7, window_bounds = array<i64: 1, 16, 8>}, {transform_indices = @transform_8, window_bounds = array<i64: 1, 16, 8>}]} {
    %c0_i32 = arith.constant 0 : i32
    %0 = arith.cmpi eq, %arg2, %c0_i32 : i32
    %1 = arith.extui %0 : i1 to i32
    %c0_i32_0 = arith.constant 0 : i32
    %2 = arith.cmpi ne, %1, %c0_i32_0 : i32
    scf.if %2 {
      %c0_22 = arith.constant 0 : index
      %c0_23 = arith.constant 0 : index
      %c0_24 = arith.constant 0 : index
      %22 = vector.load %arg3[%c0_22, %c0_23, %c0_24] : memref<1x16x32xf32, #tpu.memory_space<vmem>>, vector<1x16x32xf32>
      %23 = vector.shape_cast %22 : vector<1x16x32xf32> to vector<16x32xf32>
      %c0_25 = arith.constant 0 : index
      %c0_26 = arith.constant 0 : index
      %24 = vector.load %arg4[%c0_25, %c0_26] : memref<1x32xf32, #tpu.memory_space<vmem>>, vector<1x32xf32>
      %c0_27 = arith.constant 0 : index
      %c0_28 = arith.constant 0 : index
      %25 = vector.load %arg5[%c0_27, %c0_28] : memref<1x32xf32, #tpu.memory_space<vmem>>, vector<1x32xf32>
      %cst_29 = arith.constant dense<0.000000e+00> : vector<16xf32>
      %26 = vector.multi_reduction <add>, %23, %cst_29 [1] : vector<16x32xf32> to vector<16xf32>
      %27 = vector.shape_cast %26 : vector<16xf32> to vector<16x1xf32>
      %cst_30 = arith.constant 3.200000e+01 : f32
      %28 = vector.broadcast %cst_30 : f32 to vector<16x1xf32>
      %29 = arith.divf %27, %28 : vector<16x1xf32>
      %30 = vector.broadcast %29 : vector<16x1xf32> to vector<16x32xf32>
      %31 = arith.subf %23, %30 : vector<16x32xf32>
      %32 = arith.mulf %31, %31 : vector<16x32xf32>
      %cst_31 = arith.constant dense<0.000000e+00> : vector<16xf32>
      %33 = vector.multi_reduction <add>, %32, %cst_31 [1] : vector<16x32xf32> to vector<16xf32>
      %34 = vector.shape_cast %33 : vector<16xf32> to vector<16x1xf32>
      %cst_32 = arith.constant 3.200000e+01 : f32
      %35 = vector.broadcast %cst_32 : f32 to vector<16x1xf32>
      %36 = arith.divf %34, %35 : vector<16x1xf32>
      %37 = vector.broadcast %29 : vector<16x1xf32> to vector<16x32xf32>
      %38 = arith.subf %23, %37 : vector<16x32xf32>
      %cst_33 = arith.constant 9.99999974E-6 : f32
      %39 = vector.broadcast %cst_33 : f32 to vector<16x1xf32>
      %40 = arith.addf %36, %39 : vector<16x1xf32>
      %41 = math.rsqrt %40 : vector<16x1xf32>
      %42 = vector.broadcast %41 : vector<16x1xf32> to vector<16x32xf32>
      %43 = arith.mulf %38, %42 : vector<16x32xf32>
      %44 = vector.broadcast %24 : vector<1x32xf32> to vector<16x32xf32>
      %45 = arith.mulf %43, %44 : vector<16x32xf32>
      %46 = vector.broadcast %25 : vector<1x32xf32> to vector<16x32xf32>
      %47 = arith.addf %45, %46 : vector<16x32xf32>
      %c0_34 = arith.constant 0 : index
      %c0_35 = arith.constant 0 : index
      %48 = vector.load %arg12[%c0_34, %c0_35] : memref<16x32xf32, #tpu.memory_space<vmem>>, vector<16x32xf32>
      tpu.vector_store %arg12[%c0_34, %c0_35], %47 {strides = array<i32>} : memref<16x32xf32, #tpu.memory_space<vmem>>, vector<16x32xf32>,
    } else {
    }
    %c0 = arith.constant 0 : index
    %c0_1 = arith.constant 0 : index
    %3 = vector.load %arg12[%c0, %c0_1] : memref<16x32xf32, #tpu.memory_space<vmem>>, vector<16x32xf32>
    %c0_2 = arith.constant 0 : index
    %c0_3 = arith.constant 0 : index
    %c0_4 = arith.constant 0 : index
    %4 = vector.load %arg6[%c0_2, %c0_3, %c0_4] : memref<1x32x8xf32, #tpu.memory_space<vmem>>, vector<1x32x8xf32>
    %5 = vector.shape_cast %4 : vector<1x32x8xf32> to vector<32x8xf32>
    %cst = arith.constant dense<0.000000e+00> : vector<16x8xf32>
    %6 = tpu.matmul %3, %5, %cst {dimension_numbers = #tpu.dot_dimension_numbers<[1], [0], [0], [1], [0, 0, 1, 1], [], []>} : vector<16x32xf32>, vector<32x8xf32>, vector<16x8xf32> -> vector<16x8xf32>
    %c0_5 = arith.constant 0 : index
    %c0_6 = arith.constant 0 : index
    %c0_7 = arith.constant 0 : index
    %7 = vector.load %arg9[%c0_5, %c0_6, %c0_7] : memref<1x16x8xf32, #tpu.memory_space<vmem>>, vector<1x16x8xf32>
    %8 = vector.shape_cast %7 : vector<1x16x8xf32> to vector<16x8xf32>
    %9 = vector.shape_cast %6 : vector<16x8xf32> to vector<1x16x8xf32>
    tpu.vector_store %arg9[%c0_5, %c0_6, %c0_7], %9 {strides = array<i32>} : memref<1x16x8xf32, #tpu.memory_space<vmem>>, vector<1x16x8xf32>,
    %c0_8 = arith.constant 0 : index
    %c0_9 = arith.constant 0 : index
    %c0_10 = arith.constant 0 : index
    %10 = vector.load %arg7[%c0_8, %c0_9, %c0_10] : memref<1x32x8xf32, #tpu.memory_space<vmem>>, vector<1x32x8xf32>
    %11 = vector.shape_cast %10 : vector<1x32x8xf32> to vector<32x8xf32>
    %cst_11 = arith.constant dense<0.000000e+00> : vector<16x8xf32>
    %12 = tpu.matmul %3, %11, %cst_11 {dimension_numbers = #tpu.dot_dimension_numbers<[1], [0], [0], [1], [0, 0, 1, 1], [], []>} : vector<16x32xf32>, vector<32x8xf32>, vector<16x8xf32> -> vector<16x8xf32>
    %c0_12 = arith.constant 0 : index
    %c0_13 = arith.constant 0 : index
    %c0_14 = arith.constant 0 : index
    %13 = vector.load %arg10[%c0_12, %c0_13, %c0_14] : memref<1x16x8xf32, #tpu.memory_space<vmem>>, vector<1x16x8xf32>
    %14 = vector.shape_cast %13 : vector<1x16x8xf32> to vector<16x8xf32>
    %15 = vector.shape_cast %12 : vector<16x8xf32> to vector<1x16x8xf32>
    tpu.vector_store %arg10[%c0_12, %c0_13, %c0_14], %15 {strides = array<i32>} : memref<1x16x8xf32, #tpu.memory_space<vmem>>, vector<1x16x8xf32>,
    %c0_15 = arith.constant 0 : index
    %c0_16 = arith.constant 0 : index
    %c0_17 = arith.constant 0 : index
    %16 = vector.load %arg8[%c0_15, %c0_16, %c0_17] : memref<1x32x8xf32, #tpu.memory_space<vmem>>, vector<1x32x8xf32>
    %17 = vector.shape_cast %16 : vector<1x32x8xf32> to vector<32x8xf32>
    %cst_18 = arith.constant dense<0.000000e+00> : vector<16x8xf32>
    %18 = tpu.matmul %3, %17, %cst_18 {dimension_numbers = #tpu.dot_dimension_numbers<[1], [0], [0], [1], [0, 0, 1, 1], [], []>} : vector<16x32xf32>, vector<32x8xf32>, vector<16x8xf32> -> vector<16x8xf32>
    %c0_19 = arith.constant 0 : index
    %c0_20 = arith.constant 0 : index
    %c0_21 = arith.constant 0 : index
    %19 = vector.load %arg11[%c0_19, %c0_20, %c0_21] : memref<1x16x8xf32, #tpu.memory_space<vmem>>, vector<1x16x8xf32>
    %20 = vector.shape_cast %19 : vector<1x16x8xf32> to vector<16x8xf32>
    %21 = vector.shape_cast %18 : vector<16x8xf32> to vector<1x16x8xf32>
    tpu.vector_store %arg11[%c0_19, %c0_20, %c0_21], %21 {strides = array<i32>} : memref<1x16x8xf32, #tpu.memory_space<vmem>>, vector<1x16x8xf32>,
    return
  }
  func.func @transform_0(%arg0: i32, %arg1: i32, %arg2: i32) -> (i32, i32, i32) {
    %c0_i32 = arith.constant 0 : i32
    %c0_i32_0 = arith.constant 0 : i32
    return %arg0, %arg1, %c0_i32 : i32, i32, i32
  }
  func.func @transform_1(%arg0: i32, %arg1: i32, %arg2: i32) -> (i32, i32) {
    %c0_i32 = arith.constant 0 : i32
    %c0_i32_0 = arith.constant 0 : i32
    %c0_i32_1 = arith.constant 0 : i32
    return %c0_i32, %c0_i32_0 : i32, i32
  }
  func.func @transform_2(%arg0: i32, %arg1: i32, %arg2: i32) -> (i32, i32) {
    %c0_i32 = arith.constant 0 : i32
    %c0_i32_0 = arith.constant 0 : i32
    %c0_i32_1 = arith.constant 0 : i32
    return %c0_i32, %c0_i32_0 : i32, i32
  }
  func.func @transform_3(%arg0: i32, %arg1: i32, %arg2: i32) -> (i32, i32, i32) {
    %c0_i32 = arith.constant 0 : i32
    %c0_i32_0 = arith.constant 0 : i32
    %c0_i32_1 = arith.constant 0 : i32
    return %arg2, %c0_i32, %c0_i32_0 : i32, i32, i32
  }
  func.func @transform_4(%arg0: i32, %arg1: i32, %arg2: i32) -> (i32, i32, i32) {
    %c0_i32 = arith.constant 0 : i32
    %c0_i32_0 = arith.constant 0 : i32
    %c0_i32_1 = arith.constant 0 : i32
    return %arg2, %c0_i32, %c0_i32_0 : i32, i32, i32
  }
  func.func @transform_5(%arg0: i32, %arg1: i32, %arg2: i32) -> (i32, i32, i32) {
    %c0_i32 = arith.constant 0 : i32
    %c0_i32_0 = arith.constant 0 : i32
    %c0_i32_1 = arith.constant 0 : i32
    return %arg2, %c0_i32, %c0_i32_0 : i32, i32, i32
  }
  func.func @transform_6(%arg0: i32, %arg1: i32, %arg2: i32) -> (i32, i32, i32) {
    %c4_i32 = arith.constant 4 : i32
    %0 = arith.muli %arg0, %c4_i32 : i32
    %1 = arith.addi %0, %arg2 : i32
    %c0_i32 = arith.constant 0 : i32
    %c0_i32_0 = arith.constant 0 : i32
    return %1, %arg1, %c0_i32 : i32, i32, i32
  }
  func.func @transform_7(%arg0: i32, %arg1: i32, %arg2: i32) -> (i32, i32, i32) {
    %c4_i32 = arith.constant 4 : i32
    %0 = arith.muli %arg0, %c4_i32 : i32
    %1 = arith.addi %0, %arg2 : i32
    %c0_i32 = arith.constant 0 : i32
    %c0_i32_0 = arith.constant 0 : i32
    return %1, %arg1, %c0_i32 : i32, i32, i32
  }
  func.func @transform_8(%arg0: i32, %arg1: i32, %arg2: i32) -> (i32, i32, i32) {
    %c4_i32 = arith.constant 4 : i32
    %0 = arith.muli %arg0, %c4_i32 : i32
    %1 = arith.addi %0, %arg2 : i32
    %c0_i32 = arith.constant 0 : i32
    %c0_i32_0 = arith.constant 0 : i32
    return %1, %arg1, %c0_i32 : i32, i32, i32
  }
}

module attributes {stable_mosaic.version = 11 : i64} {
  func.func @_attn_out_kernel(%arg0: i32, %arg1: i32, %arg2: i32, %arg3: memref<1x16x8xf32, #tpu.memory_space<vmem>>, %arg4: memref<1x8x32xf32, #tpu.memory_space<vmem>>, %arg5: memref<1x32xf32, #tpu.memory_space<vmem>>, %arg6: memref<1x16x32xf32, #tpu.memory_space<vmem>>, %arg7: memref<1x16x32xf32, #tpu.memory_space<vmem>>, %arg8: memref<16x32xf32, #tpu.memory_space<vmem>>) attributes {dimension_semantics = [#tpu.dimension_semantics<parallel>, #tpu.dimension_semantics<parallel>, #tpu.dimension_semantics<arbitrary>], iteration_bounds = array<i64: 2, 1, 4>, scalar_prefetch = 0 : i64, scratch_operands = 1 : i64, tpu.core_type = #tpu.core_type<tc>, window_params = [{transform_indices = @transform_0, window_bounds = array<i64: 1, 16, 8>}, {transform_indices = @transform_1, window_bounds = array<i64: 1, 8, 32>}, {pipeline_mode = #tpu.pipeline_mode<synchronous>, transform_indices = @transform_2, window_bounds = array<i64: 1, 32>}, {transform_indices = @transform_3, window_bounds = array<i64: 1, 16, 32>}, {transform_indices = @transform_4, window_bounds = array<i64: 1, 16, 32>}]} {
    %c0_i32 = arith.constant 0 : i32
    %0 = arith.cmpi eq, %arg2, %c0_i32 : i32
    %1 = arith.extui %0 : i1 to i32
    %c0_i32_0 = arith.constant 0 : i32
    %2 = arith.cmpi ne, %1, %c0_i32_0 : i32
    scf.if %2 {
      %cst_11 = arith.constant 0.000000e+00 : f32
      %14 = vector.broadcast %cst_11 : f32 to vector<16x32xf32>
      %c0_12 = arith.constant 0 : index
      %c0_13 = arith.constant 0 : index
      %15 = vector.load %arg8[%c0_12, %c0_13] : memref<16x32xf32, #tpu.memory_space<vmem>>, vector<16x32xf32>
      tpu.vector_store %arg8[%c0_12, %c0_13], %14 {strides = array<i32>} : memref<16x32xf32, #tpu.memory_space<vmem>>, vector<16x32xf32>,
    } else {
    }
    %c0 = arith.constant 0 : index
    %c0_1 = arith.constant 0 : index
    %3 = vector.load %arg8[%c0, %c0_1] : memref<16x32xf32, #tpu.memory_space<vmem>>, vector<16x32xf32>
    %c0_2 = arith.constant 0 : index
    %c0_3 = arith.constant 0 : index
    %c0_4 = arith.constant 0 : index
    %4 = vector.load %arg3[%c0_2, %c0_3, %c0_4] : memref<1x16x8xf32, #tpu.memory_space<vmem>>, vector<1x16x8xf32>
    %5 = vector.shape_cast %4 : vector<1x16x8xf32> to vector<16x8xf32>
    %c0_5 = arith.constant 0 : index
    %c0_6 = arith.constant 0 : index
    %c0_7 = arith.constant 0 : index
    %6 = vector.load %arg4[%c0_5, %c0_6, %c0_7] : memref<1x8x32xf32, #tpu.memory_space<vmem>>, vector<1x8x32xf32>
    %7 = vector.shape_cast %6 : vector<1x8x32xf32> to vector<8x32xf32>
    %cst = arith.constant dense<0.000000e+00> : vector<16x32xf32>
    %8 = tpu.matmul %5, %7, %cst {dimension_numbers = #tpu.dot_dimension_numbers<[1], [0], [0], [1], [0, 0, 1, 1], [], []>} : vector<16x8xf32>, vector<8x32xf32>, vector<16x32xf32> -> vector<16x32xf32>
    %9 = arith.addf %3, %8 : vector<16x32xf32>
    %c0_8 = arith.constant 0 : index
    %c0_9 = arith.constant 0 : index
    %10 = vector.load %arg8[%c0_8, %c0_9] : memref<16x32xf32, #tpu.memory_space<vmem>>, vector<16x32xf32>
    tpu.vector_store %arg8[%c0_8, %c0_9], %9 {strides = array<i32>} : memref<16x32xf32, #tpu.memory_space<vmem>>, vector<16x32xf32>,
    %c3_i32 = arith.constant 3 : i32
    %11 = arith.cmpi eq, %arg2, %c3_i32 : i32
    %12 = arith.extui %11 : i1 to i32
    %c0_i32_10 = arith.constant 0 : i32
    %13 = arith.cmpi ne, %12, %c0_i32_10 : i32
    scf.if %13 {
      %c0_11 = arith.constant 0 : index
      %c0_12 = arith.constant 0 : index
      %14 = vector.load %arg8[%c0_11, %c0_12] : memref<16x32xf32, #tpu.memory_space<vmem>>, vector<16x32xf32>
      %c0_13 = arith.constant 0 : index
      %c0_14 = arith.constant 0 : index
      %15 = vector.load %arg5[%c0_13, %c0_14] : memref<1x32xf32, #tpu.memory_space<vmem>>, vector<1x32xf32>
      %16 = vector.broadcast %15 : vector<1x32xf32> to vector<16x32xf32>
      %17 = arith.addf %14, %16 : vector<16x32xf32>
      %c0_15 = arith.constant 0 : index
      %c0_16 = arith.constant 0 : index
      %c0_17 = arith.constant 0 : index
      %18 = vector.load %arg6[%c0_15, %c0_16, %c0_17] : memref<1x16x32xf32, #tpu.memory_space<vmem>>, vector<1x16x32xf32>
      %19 = vector.shape_cast %18 : vector<1x16x32xf32> to vector<16x32xf32>
      %20 = arith.addf %17, %19 : vector<16x32xf32>
      %c0_18 = arith.constant 0 : index
      %c0_19 = arith.constant 0 : index
      %c0_20 = arith.constant 0 : index
      %21 = vector.load %arg7[%c0_18, %c0_19, %c0_20] : memref<1x16x32xf32, #tpu.memory_space<vmem>>, vector<1x16x32xf32>
      %22 = vector.shape_cast %21 : vector<1x16x32xf32> to vector<16x32xf32>
      %23 = vector.shape_cast %20 : vector<16x32xf32> to vector<1x16x32xf32>
      tpu.vector_store %arg7[%c0_18, %c0_19, %c0_20], %23 {strides = array<i32>} : memref<1x16x32xf32, #tpu.memory_space<vmem>>, vector<1x16x32xf32>,
    } else {
    }
    return
  }
  func.func @transform_0(%arg0: i32, %arg1: i32, %arg2: i32) -> (i32, i32, i32) {
    %c4_i32 = arith.constant 4 : i32
    %0 = arith.muli %arg0, %c4_i32 : i32
    %1 = arith.addi %0, %arg2 : i32
    %c0_i32 = arith.constant 0 : i32
    %c0_i32_0 = arith.constant 0 : i32
    return %1, %arg1, %c0_i32 : i32, i32, i32
  }
  func.func @transform_1(%arg0: i32, %arg1: i32, %arg2: i32) -> (i32, i32, i32) {
    %c0_i32 = arith.constant 0 : i32
    %c0_i32_0 = arith.constant 0 : i32
    %c0_i32_1 = arith.constant 0 : i32
    return %arg2, %c0_i32, %c0_i32_0 : i32, i32, i32
  }
  func.func @transform_2(%arg0: i32, %arg1: i32, %arg2: i32) -> (i32, i32) {
    %c0_i32 = arith.constant 0 : i32
    %c0_i32_0 = arith.constant 0 : i32
    %c0_i32_1 = arith.constant 0 : i32
    return %c0_i32, %c0_i32_0 : i32, i32
  }
  func.func @transform_3(%arg0: i32, %arg1: i32, %arg2: i32) -> (i32, i32, i32) {
    %c0_i32 = arith.constant 0 : i32
    %c0_i32_0 = arith.constant 0 : i32
    return %arg0, %arg1, %c0_i32 : i32, i32, i32
  }
  func.func @transform_4(%arg0: i32, %arg1: i32, %arg2: i32) -> (i32, i32, i32) {
    %c0_i32 = arith.constant 0 : i32
    %c0_i32_0 = arith.constant 0 : i32
    return %arg0, %arg1, %c0_i32 : i32, i32, i32
  }
}

module attributes {stable_mosaic.version = 11 : i64} {
  func.func @_ln_q_heads_kernel(%arg0: i32, %arg1: i32, %arg2: i32, %arg3: memref<1x16x32xf32, #tpu.memory_space<vmem>>, %arg4: memref<1x32xf32, #tpu.memory_space<vmem>>, %arg5: memref<1x32xf32, #tpu.memory_space<vmem>>, %arg6: memref<1x32x8xf32, #tpu.memory_space<vmem>>, %arg7: memref<1x16x8xf32, #tpu.memory_space<vmem>>, %arg8: memref<16x32xf32, #tpu.memory_space<vmem>>) attributes {dimension_semantics = [#tpu.dimension_semantics<parallel>, #tpu.dimension_semantics<parallel>, #tpu.dimension_semantics<arbitrary>], iteration_bounds = array<i64: 2, 1, 4>, scalar_prefetch = 0 : i64, scratch_operands = 1 : i64, tpu.core_type = #tpu.core_type<tc>, window_params = [{transform_indices = @transform_0, window_bounds = array<i64: 1, 16, 32>}, {pipeline_mode = #tpu.pipeline_mode<synchronous>, transform_indices = @transform_1, window_bounds = array<i64: 1, 32>}, {pipeline_mode = #tpu.pipeline_mode<synchronous>, transform_indices = @transform_2, window_bounds = array<i64: 1, 32>}, {transform_indices = @transform_3, window_bounds = array<i64: 1, 32, 8>}, {transform_indices = @transform_4, window_bounds = array<i64: 1, 16, 8>}]} {
    %c0_i32 = arith.constant 0 : i32
    %0 = arith.cmpi eq, %arg2, %c0_i32 : i32
    %1 = arith.extui %0 : i1 to i32
    %c0_i32_0 = arith.constant 0 : i32
    %2 = arith.cmpi ne, %1, %c0_i32_0 : i32
    scf.if %2 {
      %c0_8 = arith.constant 0 : index
      %c0_9 = arith.constant 0 : index
      %c0_10 = arith.constant 0 : index
      %10 = vector.load %arg3[%c0_8, %c0_9, %c0_10] : memref<1x16x32xf32, #tpu.memory_space<vmem>>, vector<1x16x32xf32>
      %11 = vector.shape_cast %10 : vector<1x16x32xf32> to vector<16x32xf32>
      %c0_11 = arith.constant 0 : index
      %c0_12 = arith.constant 0 : index
      %12 = vector.load %arg4[%c0_11, %c0_12] : memref<1x32xf32, #tpu.memory_space<vmem>>, vector<1x32xf32>
      %c0_13 = arith.constant 0 : index
      %c0_14 = arith.constant 0 : index
      %13 = vector.load %arg5[%c0_13, %c0_14] : memref<1x32xf32, #tpu.memory_space<vmem>>, vector<1x32xf32>
      %cst_15 = arith.constant dense<0.000000e+00> : vector<16xf32>
      %14 = vector.multi_reduction <add>, %11, %cst_15 [1] : vector<16x32xf32> to vector<16xf32>
      %15 = vector.shape_cast %14 : vector<16xf32> to vector<16x1xf32>
      %cst_16 = arith.constant 3.200000e+01 : f32
      %16 = vector.broadcast %cst_16 : f32 to vector<16x1xf32>
      %17 = arith.divf %15, %16 : vector<16x1xf32>
      %18 = vector.broadcast %17 : vector<16x1xf32> to vector<16x32xf32>
      %19 = arith.subf %11, %18 : vector<16x32xf32>
      %20 = arith.mulf %19, %19 : vector<16x32xf32>
      %cst_17 = arith.constant dense<0.000000e+00> : vector<16xf32>
      %21 = vector.multi_reduction <add>, %20, %cst_17 [1] : vector<16x32xf32> to vector<16xf32>
      %22 = vector.shape_cast %21 : vector<16xf32> to vector<16x1xf32>
      %cst_18 = arith.constant 3.200000e+01 : f32
      %23 = vector.broadcast %cst_18 : f32 to vector<16x1xf32>
      %24 = arith.divf %22, %23 : vector<16x1xf32>
      %25 = vector.broadcast %17 : vector<16x1xf32> to vector<16x32xf32>
      %26 = arith.subf %11, %25 : vector<16x32xf32>
      %cst_19 = arith.constant 9.99999974E-6 : f32
      %27 = vector.broadcast %cst_19 : f32 to vector<16x1xf32>
      %28 = arith.addf %24, %27 : vector<16x1xf32>
      %29 = math.rsqrt %28 : vector<16x1xf32>
      %30 = vector.broadcast %29 : vector<16x1xf32> to vector<16x32xf32>
      %31 = arith.mulf %26, %30 : vector<16x32xf32>
      %32 = vector.broadcast %12 : vector<1x32xf32> to vector<16x32xf32>
      %33 = arith.mulf %31, %32 : vector<16x32xf32>
      %34 = vector.broadcast %13 : vector<1x32xf32> to vector<16x32xf32>
      %35 = arith.addf %33, %34 : vector<16x32xf32>
      %c0_20 = arith.constant 0 : index
      %c0_21 = arith.constant 0 : index
      %36 = vector.load %arg8[%c0_20, %c0_21] : memref<16x32xf32, #tpu.memory_space<vmem>>, vector<16x32xf32>
      tpu.vector_store %arg8[%c0_20, %c0_21], %35 {strides = array<i32>} : memref<16x32xf32, #tpu.memory_space<vmem>>, vector<16x32xf32>,
    } else {
    }
    %c0 = arith.constant 0 : index
    %c0_1 = arith.constant 0 : index
    %3 = vector.load %arg8[%c0, %c0_1] : memref<16x32xf32, #tpu.memory_space<vmem>>, vector<16x32xf32>
    %c0_2 = arith.constant 0 : index
    %c0_3 = arith.constant 0 : index
    %c0_4 = arith.constant 0 : index
    %4 = vector.load %arg6[%c0_2, %c0_3, %c0_4] : memref<1x32x8xf32, #tpu.memory_space<vmem>>, vector<1x32x8xf32>
    %5 = vector.shape_cast %4 : vector<1x32x8xf32> to vector<32x8xf32>
    %cst = arith.constant dense<0.000000e+00> : vector<16x8xf32>
    %6 = tpu.matmul %3, %5, %cst {dimension_numbers = #tpu.dot_dimension_numbers<[1], [0], [0], [1], [0, 0, 1, 1], [], []>} : vector<16x32xf32>, vector<32x8xf32>, vector<16x8xf32> -> vector<16x8xf32>
    %c0_5 = arith.constant 0 : index
    %c0_6 = arith.constant 0 : index
    %c0_7 = arith.constant 0 : index
    %7 = vector.load %arg7[%c0_5, %c0_6, %c0_7] : memref<1x16x8xf32, #tpu.memory_space<vmem>>, vector<1x16x8xf32>
    %8 = vector.shape_cast %7 : vector<1x16x8xf32> to vector<16x8xf32>
    %9 = vector.shape_cast %6 : vector<16x8xf32> to vector<1x16x8xf32>
    tpu.vector_store %arg7[%c0_5, %c0_6, %c0_7], %9 {strides = array<i32>} : memref<1x16x8xf32, #tpu.memory_space<vmem>>, vector<1x16x8xf32>,
    return
  }
  func.func @transform_0(%arg0: i32, %arg1: i32, %arg2: i32) -> (i32, i32, i32) {
    %c0_i32 = arith.constant 0 : i32
    %c0_i32_0 = arith.constant 0 : i32
    return %arg0, %arg1, %c0_i32 : i32, i32, i32
  }
  func.func @transform_1(%arg0: i32, %arg1: i32, %arg2: i32) -> (i32, i32) {
    %c0_i32 = arith.constant 0 : i32
    %c0_i32_0 = arith.constant 0 : i32
    %c0_i32_1 = arith.constant 0 : i32
    return %c0_i32, %c0_i32_0 : i32, i32
  }
  func.func @transform_2(%arg0: i32, %arg1: i32, %arg2: i32) -> (i32, i32) {
    %c0_i32 = arith.constant 0 : i32
    %c0_i32_0 = arith.constant 0 : i32
    %c0_i32_1 = arith.constant 0 : i32
    return %c0_i32, %c0_i32_0 : i32, i32
  }
  func.func @transform_3(%arg0: i32, %arg1: i32, %arg2: i32) -> (i32, i32, i32) {
    %c0_i32 = arith.constant 0 : i32
    %c0_i32_0 = arith.constant 0 : i32
    %c0_i32_1 = arith.constant 0 : i32
    return %arg2, %c0_i32, %c0_i32_0 : i32, i32, i32
  }
  func.func @transform_4(%arg0: i32, %arg1: i32, %arg2: i32) -> (i32, i32, i32) {
    %c4_i32 = arith.constant 4 : i32
    %0 = arith.muli %arg0, %c4_i32 : i32
    %1 = arith.addi %0, %arg2 : i32
    %c0_i32 = arith.constant 0 : i32
    %c0_i32_0 = arith.constant 0 : i32
    return %1, %arg1, %c0_i32 : i32, i32, i32
  }
}

module attributes {stable_mosaic.version = 11 : i64} {
  func.func @_kv_heads_kernel(%arg0: i32, %arg1: i32, %arg2: i32, %arg3: memref<1x8x32xf32, #tpu.memory_space<vmem>>, %arg4: memref<1x32x8xf32, #tpu.memory_space<vmem>>, %arg5: memref<1x32x8xf32, #tpu.memory_space<vmem>>, %arg6: memref<1x8x8xf32, #tpu.memory_space<vmem>>, %arg7: memref<1x8x8xf32, #tpu.memory_space<vmem>>) attributes {dimension_semantics = [#tpu.dimension_semantics<parallel>, #tpu.dimension_semantics<parallel>, #tpu.dimension_semantics<parallel>], iteration_bounds = array<i64: 2, 1, 4>, scalar_prefetch = 0 : i64, scratch_operands = 0 : i64, tpu.core_type = #tpu.core_type<tc>, window_params = [{transform_indices = @transform_0, window_bounds = array<i64: 1, 8, 32>}, {transform_indices = @transform_1, window_bounds = array<i64: 1, 32, 8>}, {transform_indices = @transform_2, window_bounds = array<i64: 1, 32, 8>}, {transform_indices = @transform_3, window_bounds = array<i64: 1, 8, 8>}, {transform_indices = @transform_4, window_bounds = array<i64: 1, 8, 8>}]} {
    %c0 = arith.constant 0 : index
    %c0_0 = arith.constant 0 : index
    %c0_1 = arith.constant 0 : index
    %0 = vector.load %arg3[%c0, %c0_0, %c0_1] : memref<1x8x32xf32, #tpu.memory_space<vmem>>, vector<1x8x32xf32>
    %1 = vector.shape_cast %0 : vector<1x8x32xf32> to vector<8x32xf32>
    %c0_2 = arith.constant 0 : index
    %c0_3 = arith.constant 0 : index
    %c0_4 = arith.constant 0 : index
    %2 = vector.load %arg4[%c0_2, %c0_3, %c0_4] : memref<1x32x8xf32, #tpu.memory_space<vmem>>, vector<1x32x8xf32>
    %3 = vector.shape_cast %2 : vector<1x32x8xf32> to vector<32x8xf32>
    %cst = arith.constant dense<0.000000e+00> : vector<8x8xf32>
    %4 = tpu.matmul %1, %3, %cst {dimension_numbers = #tpu.dot_dimension_numbers<[1], [0], [0], [1], [0, 0, 1, 1], [], []>} : vector<8x32xf32>, vector<32x8xf32>, vector<8x8xf32> -> vector<8x8xf32>
    %c0_5 = arith.constant 0 : index
    %c0_6 = arith.constant 0 : index
    %c0_7 = arith.constant 0 : index
    %5 = vector.load %arg6[%c0_5, %c0_6, %c0_7] : memref<1x8x8xf32, #tpu.memory_space<vmem>>, vector<1x8x8xf32>
    %6 = vector.shape_cast %5 : vector<1x8x8xf32> to vector<8x8xf32>
    %7 = vector.shape_cast %4 : vector<8x8xf32> to vector<1x8x8xf32>
    tpu.vector_store %arg6[%c0_5, %c0_6, %c0_7], %7 {strides = array<i32>} : memref<1x8x8xf32, #tpu.memory_space<vmem>>, vector<1x8x8xf32>,
    %c0_8 = arith.constant 0 : index
    %c0_9 = arith.constant 0 : index
    %c0_10 = arith.constant 0 : index
    %8 = vector.load %arg5[%c0_8, %c0_9, %c0_10] : memref<1x32x8xf32, #tpu.memory_space<vmem>>, vector<1x32x8xf32>
    %9 = vector.shape_cast %8 : vector<1x32x8xf32> to vector<32x8xf32>
    %cst_11 = arith.constant dense<0.000000e+00> : vector<8x8xf32>
    %10 = tpu.matmul %1, %9, %cst_11 {dimension_numbers = #tpu.dot_dimension_numbers<[1], [0], [0], [1], [0, 0, 1, 1], [], []>} : vector<8x32xf32>, vector<32x8xf32>, vector<8x8xf32> -> vector<8x8xf32>
    %c0_12 = arith.constant 0 : index
    %c0_13 = arith.constant 0 : index
    %c0_14 = arith.constant 0 : index
    %11 = vector.load %arg7[%c0_12, %c0_13, %c0_14] : memref<1x8x8xf32, #tpu.memory_space<vmem>>, vector<1x8x8xf32>
    %12 = vector.shape_cast %11 : vector<1x8x8xf32> to vector<8x8xf32>
    %13 = vector.shape_cast %10 : vector<8x8xf32> to vector<1x8x8xf32>
    tpu.vector_store %arg7[%c0_12, %c0_13, %c0_14], %13 {strides = array<i32>} : memref<1x8x8xf32, #tpu.memory_space<vmem>>, vector<1x8x8xf32>,
    return
  }
  func.func @transform_0(%arg0: i32, %arg1: i32, %arg2: i32) -> (i32, i32, i32) {
    %c0_i32 = arith.constant 0 : i32
    %c0_i32_0 = arith.constant 0 : i32
    return %arg0, %arg1, %c0_i32 : i32, i32, i32
  }
  func.func @transform_1(%arg0: i32, %arg1: i32, %arg2: i32) -> (i32, i32, i32) {
    %c0_i32 = arith.constant 0 : i32
    %c0_i32_0 = arith.constant 0 : i32
    %c0_i32_1 = arith.constant 0 : i32
    return %arg2, %c0_i32, %c0_i32_0 : i32, i32, i32
  }
  func.func @transform_2(%arg0: i32, %arg1: i32, %arg2: i32) -> (i32, i32, i32) {
    %c0_i32 = arith.constant 0 : i32
    %c0_i32_0 = arith.constant 0 : i32
    %c0_i32_1 = arith.constant 0 : i32
    return %arg2, %c0_i32, %c0_i32_0 : i32, i32, i32
  }
  func.func @transform_3(%arg0: i32, %arg1: i32, %arg2: i32) -> (i32, i32, i32) {
    %c4_i32 = arith.constant 4 : i32
    %0 = arith.muli %arg0, %c4_i32 : i32
    %1 = arith.addi %0, %arg2 : i32
    %c0_i32 = arith.constant 0 : i32
    %c0_i32_0 = arith.constant 0 : i32
    return %1, %arg1, %c0_i32 : i32, i32, i32
  }
  func.func @transform_4(%arg0: i32, %arg1: i32, %arg2: i32) -> (i32, i32, i32) {
    %c4_i32 = arith.constant 4 : i32
    %0 = arith.muli %arg0, %c4_i32 : i32
    %1 = arith.addi %0, %arg2 : i32
    %c0_i32 = arith.constant 0 : i32
    %c0_i32_0 = arith.constant 0 : i32
    return %1, %arg1, %c0_i32 : i32, i32, i32
  }
}

module attributes {stable_mosaic.version = 11 : i64} {
  func.func @_flash_attn_kernel(%arg0: i32, %arg1: i32, %arg2: i32, %arg3: memref<1x16x8xf32, #tpu.memory_space<vmem>>, %arg4: memref<1x8x8xf32, #tpu.memory_space<vmem>>, %arg5: memref<1x8x8xf32, #tpu.memory_space<vmem>>, %arg6: memref<1x16x8xf32, #tpu.memory_space<vmem>>, %arg7: memref<16x1xf32, #tpu.memory_space<vmem>>, %arg8: memref<16x1xf32, #tpu.memory_space<vmem>>, %arg9: memref<16x8xf32, #tpu.memory_space<vmem>>) attributes {dimension_semantics = [#tpu.dimension_semantics<parallel>, #tpu.dimension_semantics<parallel>, #tpu.dimension_semantics<arbitrary>], iteration_bounds = array<i64: 8, 1, 1>, scalar_prefetch = 0 : i64, scratch_operands = 3 : i64, tpu.core_type = #tpu.core_type<tc>, window_params = [{transform_indices = @transform_0, window_bounds = array<i64: 1, 16, 8>}, {transform_indices = @transform_1, window_bounds = array<i64: 1, 8, 8>}, {transform_indices = @transform_2, window_bounds = array<i64: 1, 8, 8>}, {transform_indices = @transform_3, window_bounds = array<i64: 1, 16, 8>}]} {
    %c0_i32 = arith.constant 0 : i32
    %0 = arith.cmpi eq, %arg2, %c0_i32 : i32
    %1 = arith.extui %0 : i1 to i32
    %c0_i32_0 = arith.constant 0 : i32
    %2 = arith.cmpi ne, %1, %c0_i32_0 : i32
    scf.if %2 {
      %cst_26 = arith.constant 0xFF800000 : f32
      %35 = vector.broadcast %cst_26 : f32 to vector<16x1xf32>
      %c0_27 = arith.constant 0 : index
      %c0_28 = arith.constant 0 : index
      %36 = vector.load %arg7[%c0_27, %c0_28] : memref<16x1xf32, #tpu.memory_space<vmem>>, vector<16x1xf32>
      tpu.vector_store %arg7[%c0_27, %c0_28], %35 {strides = array<i32>} : memref<16x1xf32, #tpu.memory_space<vmem>>, vector<16x1xf32>,
      %cst_29 = arith.constant 0.000000e+00 : f32
      %37 = vector.broadcast %cst_29 : f32 to vector<16x1xf32>
      %c0_30 = arith.constant 0 : index
      %c0_31 = arith.constant 0 : index
      %38 = vector.load %arg8[%c0_30, %c0_31] : memref<16x1xf32, #tpu.memory_space<vmem>>, vector<16x1xf32>
      tpu.vector_store %arg8[%c0_30, %c0_31], %37 {strides = array<i32>} : memref<16x1xf32, #tpu.memory_space<vmem>>, vector<16x1xf32>,
      %cst_32 = arith.constant 0.000000e+00 : f32
      %39 = vector.broadcast %cst_32 : f32 to vector<16x8xf32>
      %c0_33 = arith.constant 0 : index
      %c0_34 = arith.constant 0 : index
      %40 = vector.load %arg9[%c0_33, %c0_34] : memref<16x8xf32, #tpu.memory_space<vmem>>, vector<16x8xf32>
      tpu.vector_store %arg9[%c0_33, %c0_34], %39 {strides = array<i32>} : memref<16x8xf32, #tpu.memory_space<vmem>>, vector<16x8xf32>,
    } else {
    }
    %c0 = arith.constant 0 : index
    %c0_1 = arith.constant 0 : index
    %c0_2 = arith.constant 0 : index
    %3 = vector.load %arg3[%c0, %c0_1, %c0_2] : memref<1x16x8xf32, #tpu.memory_space<vmem>>, vector<1x16x8xf32>
    %4 = vector.shape_cast %3 : vector<1x16x8xf32> to vector<16x8xf32>
    %c0_3 = arith.constant 0 : index
    %c0_4 = arith.constant 0 : index
    %c0_5 = arith.constant 0 : index
    %5 = vector.load %arg4[%c0_3, %c0_4, %c0_5] : memref<1x8x8xf32, #tpu.memory_space<vmem>>, vector<1x8x8xf32>
    %6 = vector.shape_cast %5 : vector<1x8x8xf32> to vector<8x8xf32>
    %cst = arith.constant dense<0.000000e+00> : vector<16x8xf32>
    %7 = tpu.matmul %4, %6, %cst {dimension_numbers = #tpu.dot_dimension_numbers<[1], [1], [0], [0], [0, 0, 1, 0], [], []>} : vector<16x8xf32>, vector<8x8xf32>, vector<16x8xf32> -> vector<16x8xf32>
    %c0_6 = arith.constant 0 : index
    %c0_7 = arith.constant 0 : index
    %8 = vector.load %arg7[%c0_6, %c0_7] : memref<16x1xf32, #tpu.memory_space<vmem>>, vector<16x1xf32>
    %cst_8 = arith.constant dense<0xFF800000> : vector<16xf32>
    %9 = vector.multi_reduction <maximumf>, %7, %cst_8 [1] : vector<16x8xf32> to vector<16xf32>
    %10 = vector.shape_cast %9 : vector<16xf32> to vector<16x1xf32>
    %11 = arith.maximumf %8, %10 : vector<16x1xf32>
    %12 = arith.subf %8, %11 : vector<16x1xf32>
    %13 = math.exp %12 : vector<16x1xf32>
    %14 = vector.broadcast %11 : vector<16x1xf32> to vector<16x8xf32>
    %15 = arith.subf %7, %14 : vector<16x8xf32>
    %16 = math.exp %15 : vector<16x8xf32>
    %c0_9 = arith.constant 0 : index
    %c0_10 = arith.constant 0 : index
    %17 = vector.load %arg8[%c0_9, %c0_10] : memref<16x1xf32, #tpu.memory_space<vmem>>, vector<16x1xf32>
    %18 = arith.mulf %13, %17 : vector<16x1xf32>
    %cst_11 = arith.constant dense<0.000000e+00> : vector<16xf32>
    %19 = vector.multi_reduction <add>, %16, %cst_11 [1] : vector<16x8xf32> to vector<16xf32>
    %20 = vector.shape_cast %19 : vector<16xf32> to vector<16x1xf32>
    %21 = arith.addf %18, %20 : vector<16x1xf32>
    %c0_12 = arith.constant 0 : index
    %c0_13 = arith.constant 0 : index
    %22 = vector.load %arg8[%c0_12, %c0_13] : memref<16x1xf32, #tpu.memory_space<vmem>>, vector<16x1xf32>
    tpu.vector_store %arg8[%c0_12, %c0_13], %21 {strides = array<i32>} : memref<16x1xf32, #tpu.memory_space<vmem>>, vector<16x1xf32>,
    %c0_14 = arith.constant 0 : index
    %c0_15 = arith.constant 0 : index
    %23 = vector.load %arg9[%c0_14, %c0_15] : memref<16x8xf32, #tpu.memory_space<vmem>>, vector<16x8xf32>
    %24 = vector.broadcast %13 : vector<16x1xf32> to vector<16x8xf32>
    %25 = arith.mulf %24, %23 : vector<16x8xf32>
    %c0_16 = arith.constant 0 : index
    %c0_17 = arith.constant 0 : index
    %c0_18 = arith.constant 0 : index
    %26 = vector.load %arg5[%c0_16, %c0_17, %c0_18] : memref<1x8x8xf32, #tpu.memory_space<vmem>>, vector<1x8x8xf32>
    %27 = vector.shape_cast %26 : vector<1x8x8xf32> to vector<8x8xf32>
    %cst_19 = arith.constant dense<0.000000e+00> : vector<16x8xf32>
    %28 = tpu.matmul %16, %27, %cst_19 {dimension_numbers = #tpu.dot_dimension_numbers<[1], [0], [0], [1], [0, 0, 1, 1], [], []>} : vector<16x8xf32>, vector<8x8xf32>, vector<16x8xf32> -> vector<16x8xf32>
    %29 = arith.addf %25, %28 : vector<16x8xf32>
    %c0_20 = arith.constant 0 : index
    %c0_21 = arith.constant 0 : index
    %30 = vector.load %arg9[%c0_20, %c0_21] : memref<16x8xf32, #tpu.memory_space<vmem>>, vector<16x8xf32>
    tpu.vector_store %arg9[%c0_20, %c0_21], %29 {strides = array<i32>} : memref<16x8xf32, #tpu.memory_space<vmem>>, vector<16x8xf32>,
    %c0_22 = arith.constant 0 : index
    %c0_23 = arith.constant 0 : index
    %31 = vector.load %arg7[%c0_22, %c0_23] : memref<16x1xf32, #tpu.memory_space<vmem>>, vector<16x1xf32>
    tpu.vector_store %arg7[%c0_22, %c0_23], %11 {strides = array<i32>} : memref<16x1xf32, #tpu.memory_space<vmem>>, vector<16x1xf32>,
    %c0_i32_24 = arith.constant 0 : i32
    %32 = arith.cmpi eq, %arg2, %c0_i32_24 : i32
    %33 = arith.extui %32 : i1 to i32
    %c0_i32_25 = arith.constant 0 : i32
    %34 = arith.cmpi ne, %33, %c0_i32_25 : i32
    scf.if %34 {
      %c0_26 = arith.constant 0 : index
      %c0_27 = arith.constant 0 : index
      %35 = vector.load %arg9[%c0_26, %c0_27] : memref<16x8xf32, #tpu.memory_space<vmem>>, vector<16x8xf32>
      %c0_28 = arith.constant 0 : index
      %c0_29 = arith.constant 0 : index
      %36 = vector.load %arg8[%c0_28, %c0_29] : memref<16x1xf32, #tpu.memory_space<vmem>>, vector<16x1xf32>
      %37 = vector.broadcast %36 : vector<16x1xf32> to vector<16x8xf32>
      %38 = arith.divf %35, %37 : vector<16x8xf32>
      %c0_30 = arith.constant 0 : index
      %c0_31 = arith.constant 0 : index
      %c0_32 = arith.constant 0 : index
      %39 = vector.load %arg6[%c0_30, %c0_31, %c0_32] : memref<1x16x8xf32, #tpu.memory_space<vmem>>, vector<1x16x8xf32>
      %40 = vector.shape_cast %39 : vector<1x16x8xf32> to vector<16x8xf32>
      %41 = vector.shape_cast %38 : vector<16x8xf32> to vector<1x16x8xf32>
      tpu.vector_store %arg6[%c0_30, %c0_31, %c0_32], %41 {strides = array<i32>} : memref<1x16x8xf32, #tpu.memory_space<vmem>>, vector<1x16x8xf32>,
    } else {
    }
    return
  }
  func.func @transform_0(%arg0: i32, %arg1: i32, %arg2: i32) -> (i32, i32, i32) {
    %c0_i32 = arith.constant 0 : i32
    %c0_i32_0 = arith.constant 0 : i32
    return %arg0, %arg1, %c0_i32 : i32, i32, i32
  }
  func.func @transform_1(%arg0: i32, %arg1: i32, %arg2: i32) -> (i32, i32, i32) {
    %c0_i32 = arith.constant 0 : i32
    %c0_i32_0 = arith.constant 0 : i32
    return %arg0, %arg2, %c0_i32 : i32, i32, i32
  }
  func.func @transform_2(%arg0: i32, %arg1: i32, %arg2: i32) -> (i32, i32, i32) {
    %c0_i32 = arith.constant 0 : i32
    %c0_i32_0 = arith.constant 0 : i32
    return %arg0, %arg2, %c0_i32 : i32, i32, i32
  }
  func.func @transform_3(%arg0: i32, %arg1: i32, %arg2: i32) -> (i32, i32, i32) {
    %c0_i32 = arith.constant 0 : i32
    %c0_i32_0 = arith.constant 0 : i32
    return %arg0, %arg1, %c0_i32 : i32, i32, i32
  }
}

module attributes {stable_mosaic.version = 11 : i64} {
  func.func @_ln_geglu_kernel(%arg0: i32, %arg1: i32, %arg2: memref<32x32xf32, #tpu.memory_space<vmem>>, %arg3: memref<1x32xf32, #tpu.memory_space<vmem>>, %arg4: memref<1x32xf32, #tpu.memory_space<vmem>>, %arg5: memref<32x128xf32, #tpu.memory_space<vmem>>, %arg6: memref<32x128xf32, #tpu.memory_space<vmem>>, %arg7: memref<1x128xf32, #tpu.memory_space<vmem>>, %arg8: memref<1x128xf32, #tpu.memory_space<vmem>>, %arg9: memref<32x128xf32, #tpu.memory_space<vmem>>, %arg10: memref<32x32xf32, #tpu.memory_space<vmem>>) attributes {dimension_semantics = [#tpu.dimension_semantics<parallel>, #tpu.dimension_semantics<arbitrary>], iteration_bounds = array<i64: 1, 1>, scalar_prefetch = 0 : i64, scratch_operands = 1 : i64, tpu.core_type = #tpu.core_type<tc>, window_params = [{transform_indices = @transform_0, window_bounds = array<i64: 32, 32>}, {pipeline_mode = #tpu.pipeline_mode<synchronous>, transform_indices = @transform_1, window_bounds = array<i64: 1, 32>}, {pipeline_mode = #tpu.pipeline_mode<synchronous>, transform_indices = @transform_2, window_bounds = array<i64: 1, 32>}, {transform_indices = @transform_3, window_bounds = array<i64: 32, 128>}, {transform_indices = @transform_4, window_bounds = array<i64: 32, 128>}, {transform_indices = @transform_5, window_bounds = array<i64: 1, 128>}, {transform_indices = @transform_6, window_bounds = array<i64: 1, 128>}, {transform_indices = @transform_7, window_bounds = array<i64: 32, 128>}]} {
    %c0_i32 = arith.constant 0 : i32
    %0 = arith.cmpi eq, %arg1, %c0_i32 : i32
    %1 = arith.extui %0 : i1 to i32
    %c0_i32_0 = arith.constant 0 : i32
    %2 = arith.cmpi ne, %1, %c0_i32_0 : i32
    scf.if %2 {
      %c0_16 = arith.constant 0 : index
      %c0_17 = arith.constant 0 : index
      %24 = vector.load %arg2[%c0_16, %c0_17] : memref<32x32xf32, #tpu.memory_space<vmem>>, vector<32x32xf32>
      %c0_18 = arith.constant 0 : index
      %c0_19 = arith.constant 0 : index
      %25 = vector.load %arg3[%c0_18, %c0_19] : memref<1x32xf32, #tpu.memory_space<vmem>>, vector<1x32xf32>
      %c0_20 = arith.constant 0 : index
      %c0_21 = arith.constant 0 : index
      %26 = vector.load %arg4[%c0_20, %c0_21] : memref<1x32xf32, #tpu.memory_space<vmem>>, vector<1x32xf32>
      %cst_22 = arith.constant dense<0.000000e+00> : vector<32xf32>
      %27 = vector.multi_reduction <add>, %24, %cst_22 [1] : vector<32x32xf32> to vector<32xf32>
      %28 = vector.shape_cast %27 : vector<32xf32> to vector<32x1xf32>
      %cst_23 = arith.constant 3.200000e+01 : f32
      %29 = vector.broadcast %cst_23 : f32 to vector<32x1xf32>
      %30 = arith.divf %28, %29 : vector<32x1xf32>
      %31 = vector.broadcast %30 : vector<32x1xf32> to vector<32x32xf32>
      %32 = arith.subf %24, %31 : vector<32x32xf32>
      %33 = arith.mulf %32, %32 : vector<32x32xf32>
      %cst_24 = arith.constant dense<0.000000e+00> : vector<32xf32>
      %34 = vector.multi_reduction <add>, %33, %cst_24 [1] : vector<32x32xf32> to vector<32xf32>
      %35 = vector.shape_cast %34 : vector<32xf32> to vector<32x1xf32>
      %cst_25 = arith.constant 3.200000e+01 : f32
      %36 = vector.broadcast %cst_25 : f32 to vector<32x1xf32>
      %37 = arith.divf %35, %36 : vector<32x1xf32>
      %38 = vector.broadcast %30 : vector<32x1xf32> to vector<32x32xf32>
      %39 = arith.subf %24, %38 : vector<32x32xf32>
      %cst_26 = arith.constant 9.99999974E-6 : f32
      %40 = vector.broadcast %cst_26 : f32 to vector<32x1xf32>
      %41 = arith.addf %37, %40 : vector<32x1xf32>
      %42 = math.rsqrt %41 : vector<32x1xf32>
      %43 = vector.broadcast %42 : vector<32x1xf32> to vector<32x32xf32>
      %44 = arith.mulf %39, %43 : vector<32x32xf32>
      %45 = vector.broadcast %25 : vector<1x32xf32> to vector<32x32xf32>
      %46 = arith.mulf %44, %45 : vector<32x32xf32>
      %47 = vector.broadcast %26 : vector<1x32xf32> to vector<32x32xf32>
      %48 = arith.addf %46, %47 : vector<32x32xf32>
      %c0_27 = arith.constant 0 : index
      %c0_28 = arith.constant 0 : index
      %49 = vector.load %arg10[%c0_27, %c0_28] : memref<32x32xf32, #tpu.memory_space<vmem>>, vector<32x32xf32>
      tpu.vector_store %arg10[%c0_27, %c0_28], %48 {strides = array<i32>} : memref<32x32xf32, #tpu.memory_space<vmem>>, vector<32x32xf32>,
    } else {
    }
    %c0 = arith.constant 0 : index
    %c0_1 = arith.constant 0 : index
    %3 = vector.load %arg10[%c0, %c0_1] : memref<32x32xf32, #tpu.memory_space<vmem>>, vector<32x32xf32>
    %c0_2 = arith.constant 0 : index
    %c0_3 = arith.constant 0 : index
    %4 = vector.load %arg5[%c0_2, %c0_3] : memref<32x128xf32, #tpu.memory_space<vmem>>, vector<32x128xf32>
    %cst = arith.constant dense<0.000000e+00> : vector<32x128xf32>
    %5 = tpu.matmul %3, %4, %cst {dimension_numbers = #tpu.dot_dimension_numbers<[1], [0], [0], [1], [0, 0, 1, 1], [], []>} : vector<32x32xf32>, vector<32x128xf32>, vector<32x128xf32> -> vector<32x128xf32>
    %c0_4 = arith.constant 0 : index
    %c0_5 = arith.constant 0 : index
    %6 = vector.load %arg7[%c0_4, %c0_5] : memref<1x128xf32, #tpu.memory_space<vmem>>, vector<1x128xf32>
    %7 = vector.broadcast %6 : vector<1x128xf32> to vector<32x128xf32>
    %8 = arith.addf %5, %7 : vector<32x128xf32>
    %c0_6 = arith.constant 0 : index
    %c0_7 = arith.constant 0 : index
    %9 = vector.load %arg6[%c0_6, %c0_7] : memref<32x128xf32, #tpu.memory_space<vmem>>, vector<32x128xf32>
    %cst_8 = arith.constant dense<0.000000e+00> : vector<32x128xf32>
    %10 = tpu.matmul %3, %9, %cst_8 {dimension_numbers = #tpu.dot_dimension_numbers<[1], [0], [0], [1], [0, 0, 1, 1], [], []>} : vector<32x32xf32>, vector<32x128xf32>, vector<32x128xf32> -> vector<32x128xf32>
    %c0_9 = arith.constant 0 : index
    %c0_10 = arith.constant 0 : index
    %11 = vector.load %arg8[%c0_9, %c0_10] : memref<1x128xf32, #tpu.memory_space<vmem>>, vector<1x128xf32>
    %12 = vector.broadcast %11 : vector<1x128xf32> to vector<32x128xf32>
    %13 = arith.addf %10, %12 : vector<32x128xf32>
    %cst_11 = arith.constant 5.000000e-01 : f32
    %14 = vector.broadcast %cst_11 : f32 to vector<32x128xf32>
    %15 = arith.mulf %14, %13 : vector<32x128xf32>
    %cst_12 = arith.constant 0.707106769 : f32
    %16 = vector.broadcast %cst_12 : f32 to vector<32x128xf32>
    %17 = arith.mulf %13, %16 : vector<32x128xf32>
    %18 = math.erf %17 : vector<32x128xf32>
    %cst_13 = arith.constant 1.000000e+00 : f32
    %19 = vector.broadcast %cst_13 : f32 to vector<32x128xf32>
    %20 = arith.addf %19, %18 : vector<32x128xf32>
    %21 = arith.mulf %15, %20 : vector<32x128xf32>
    %22 = arith.mulf %8, %21 : vector<32x128xf32>
    %c0_14 = arith.constant 0 : index
    %c0_15 = arith.constant 0 : index
    %23 = vector.load %arg9[%c0_14, %c0_15] : memref<32x128xf32, #tpu.memory_space<vmem>>, vector<32x128xf32>
    tpu.vector_store %arg9[%c0_14, %c0_15], %22 {strides = array<i32>} : memref<32x128xf32, #tpu.memory_space<vmem>>, vector<32x128xf32>,
    return
  }
  func.func @transform_0(%arg0: i32, %arg1: i32) -> (i32, i32) {
    %c0_i32 = arith.constant 0 : i32
    %c0_i32_0 = arith.constant 0 : i32
    return %arg0, %c0_i32 : i32, i32
  }
  func.func @transform_1(%arg0: i32, %arg1: i32) -> (i32, i32) {
    %c0_i32 = arith.constant 0 : i32
    %c0_i32_0 = arith.constant 0 : i32
    %c0_i32_1 = arith.constant 0 : i32
    return %c0_i32, %c0_i32_0 : i32, i32
  }
  func.func @transform_2(%arg0: i32, %arg1: i32) -> (i32, i32) {
    %c0_i32 = arith.constant 0 : i32
    %c0_i32_0 = arith.constant 0 : i32
    %c0_i32_1 = arith.constant 0 : i32
    return %c0_i32, %c0_i32_0 : i32, i32
  }
  func.func @transform_3(%arg0: i32, %arg1: i32) -> (i32, i32) {
    %c0_i32 = arith.constant 0 : i32
    %c0_i32_0 = arith.constant 0 : i32
    return %c0_i32, %arg1 : i32, i32
  }
  func.func @transform_4(%arg0: i32, %arg1: i32) -> (i32, i32) {
    %c0_i32 = arith.constant 0 : i32
    %c0_i32_0 = arith.constant 0 : i32
    return %c0_i32, %arg1 : i32, i32
  }
  func.func @transform_5(%arg0: i32, %arg1: i32) -> (i32, i32) {
    %c0_i32 = arith.constant 0 : i32
    %c0_i32_0 = arith.constant 0 : i32
    return %c0_i32, %arg1 : i32, i32
  }
  func.func @transform_6(%arg0: i32, %arg1: i32) -> (i32, i32) {
    %c0_i32 = arith.constant 0 : i32
    %c0_i32_0 = arith.constant 0 : i32
    return %c0_i32, %arg1 : i32, i32
  }
  func.func @transform_7(%arg0: i32, %arg1: i32) -> (i32, i32) {
    %c0_i32 = arith.constant 0 : i32
    return %arg0, %arg1 : i32, i32
  }
}

module attributes {stable_mosaic.version = 11 : i64} {
  func.func @_matmul_bias_res_kernel(%arg0: i32, %arg1: i32, %arg2: i32, %arg3: memref<32x128xf32, #tpu.memory_space<vmem>>, %arg4: memref<128x32xf32, #tpu.memory_space<vmem>>, %arg5: memref<1x32xf32, #tpu.memory_space<vmem>>, %arg6: memref<32x32xf32, #tpu.memory_space<vmem>>, %arg7: memref<32x32xf32, #tpu.memory_space<vmem>>, %arg8: memref<32x32xf32, #tpu.memory_space<vmem>>) attributes {dimension_semantics = [#tpu.dimension_semantics<parallel>, #tpu.dimension_semantics<parallel>, #tpu.dimension_semantics<arbitrary>], iteration_bounds = array<i64: 1, 1, 1>, scalar_prefetch = 0 : i64, scratch_operands = 1 : i64, tpu.core_type = #tpu.core_type<tc>, window_params = [{transform_indices = @transform_0, window_bounds = array<i64: 32, 128>}, {transform_indices = @transform_1, window_bounds = array<i64: 128, 32>}, {transform_indices = @transform_2, window_bounds = array<i64: 1, 32>}, {transform_indices = @transform_3, window_bounds = array<i64: 32, 32>}, {transform_indices = @transform_4, window_bounds = array<i64: 32, 32>}]} {
    %c0_i32 = arith.constant 0 : i32
    %0 = arith.cmpi eq, %arg2, %c0_i32 : i32
    %1 = arith.extui %0 : i1 to i32
    %c0_i32_0 = arith.constant 0 : i32
    %2 = arith.cmpi ne, %1, %c0_i32_0 : i32
    scf.if %2 {
      %cst_10 = arith.constant 0.000000e+00 : f32
      %12 = vector.broadcast %cst_10 : f32 to vector<32x32xf32>
      %c0_11 = arith.constant 0 : index
      %c0_12 = arith.constant 0 : index
      %13 = vector.load %arg8[%c0_11, %c0_12] : memref<32x32xf32, #tpu.memory_space<vmem>>, vector<32x32xf32>
      tpu.vector_store %arg8[%c0_11, %c0_12], %12 {strides = array<i32>} : memref<32x32xf32, #tpu.memory_space<vmem>>, vector<32x32xf32>,
    } else {
    }
    %c0 = arith.constant 0 : index
    %c0_1 = arith.constant 0 : index
    %3 = vector.load %arg8[%c0, %c0_1] : memref<32x32xf32, #tpu.memory_space<vmem>>, vector<32x32xf32>
    %c0_2 = arith.constant 0 : index
    %c0_3 = arith.constant 0 : index
    %4 = vector.load %arg3[%c0_2, %c0_3] : memref<32x128xf32, #tpu.memory_space<vmem>>, vector<32x128xf32>
    %c0_4 = arith.constant 0 : index
    %c0_5 = arith.constant 0 : index
    %5 = vector.load %arg4[%c0_4, %c0_5] : memref<128x32xf32, #tpu.memory_space<vmem>>, vector<128x32xf32>
    %cst = arith.constant dense<0.000000e+00> : vector<32x32xf32>
    %6 = tpu.matmul %4, %5, %cst {dimension_numbers = #tpu.dot_dimension_numbers<[1], [0], [0], [1], [0, 0, 1, 1], [], []>} : vector<32x128xf32>, vector<128x32xf32>, vector<32x32xf32> -> vector<32x32xf32>
    %7 = arith.addf %3, %6 : vector<32x32xf32>
    %c0_6 = arith.constant 0 : index
    %c0_7 = arith.constant 0 : index
    %8 = vector.load %arg8[%c0_6, %c0_7] : memref<32x32xf32, #tpu.memory_space<vmem>>, vector<32x32xf32>
    tpu.vector_store %arg8[%c0_6, %c0_7], %7 {strides = array<i32>} : memref<32x32xf32, #tpu.memory_space<vmem>>, vector<32x32xf32>,
    %c0_i32_8 = arith.constant 0 : i32
    %9 = arith.cmpi eq, %arg2, %c0_i32_8 : i32
    %10 = arith.extui %9 : i1 to i32
    %c0_i32_9 = arith.constant 0 : i32
    %11 = arith.cmpi ne, %10, %c0_i32_9 : i32
    scf.if %11 {
      %c0_10 = arith.constant 0 : index
      %c0_11 = arith.constant 0 : index
      %12 = vector.load %arg8[%c0_10, %c0_11] : memref<32x32xf32, #tpu.memory_space<vmem>>, vector<32x32xf32>
      %c0_12 = arith.constant 0 : index
      %c0_13 = arith.constant 0 : index
      %13 = vector.load %arg5[%c0_12, %c0_13] : memref<1x32xf32, #tpu.memory_space<vmem>>, vector<1x32xf32>
      %14 = vector.broadcast %13 : vector<1x32xf32> to vector<32x32xf32>
      %15 = arith.addf %12, %14 : vector<32x32xf32>
      %c0_14 = arith.constant 0 : index
      %c0_15 = arith.constant 0 : index
      %16 = vector.load %arg6[%c0_14, %c0_15] : memref<32x32xf32, #tpu.memory_space<vmem>>, vector<32x32xf32>
      %17 = arith.addf %15, %16 : vector<32x32xf32>
      %c0_16 = arith.constant 0 : index
      %c0_17 = arith.constant 0 : index
      %18 = vector.load %arg7[%c0_16, %c0_17] : memref<32x32xf32, #tpu.memory_space<vmem>>, vector<32x32xf32>
      tpu.vector_store %arg7[%c0_16, %c0_17], %17 {strides = array<i32>} : memref<32x32xf32, #tpu.memory_space<vmem>>, vector<32x32xf32>,
    } else {
    }
    return
  }
  func.func @transform_0(%arg0: i32, %arg1: i32, %arg2: i32) -> (i32, i32) {
    %c0_i32 = arith.constant 0 : i32
    return %arg0, %arg2 : i32, i32
  }
  func.func @transform_1(%arg0: i32, %arg1: i32, %arg2: i32) -> (i32, i32) {
    %c0_i32 = arith.constant 0 : i32
    return %arg2, %arg1 : i32, i32
  }
  func.func @transform_2(%arg0: i32, %arg1: i32, %arg2: i32) -> (i32, i32) {
    %c0_i32 = arith.constant 0 : i32
    %c0_i32_0 = arith.constant 0 : i32
    return %c0_i32, %arg1 : i32, i32
  }
  func.func @transform_3(%arg0: i32, %arg1: i32, %arg2: i32) -> (i32, i32) {
    %c0_i32 = arith.constant 0 : i32
    return %arg0, %arg1 : i32, i32
  }
  func.func @transform_4(%arg0: i32, %arg1: i32, %arg2: i32) -> (i32, i32) {
    %c0_i32 = arith.constant 0 : i32
    return %arg0, %arg1 : i32, i32
  }
}

</mosaic_0001>

<bundles_post_ra>
// kernel: basic_transformer_block.9
= control target key start
LH: loop header
LB: loop body
LE: loop exit
PB: predicated region body
PF: predicated region fallthrough
CT: control target
= control target key end

     0   :  { %s1269_s27 = smov 0   ;;  %s1271_s28 = smov 0   ;;  %s1389_s0 = inlined_call_operand.vmem [shape: f32[2,16,32], index: 0, kind: input, shape index: {}]   ;;  %s1390_s1 = inlined_call_operand.vmem [shape: f32[1,32], index: 1, kind: input, shape index: {}]   ;;  %s1391_s2 = inlined_call_operand.vmem [shape: f32[1,32], index: 2, kind: input, shape index: {}]   ;;  %s1392_s3 = inlined_call_operand.vmem [shape: f32[4,32,8], index: 3, kind: input, shape index: {}]   ;;  %s1393_s4 = inlined_call_operand.vmem [shape: f32[4,32,8], index: 4, kind: input, shape index: {}]   ;;  %s1394_s5 = inlined_call_operand.vmem [shape: f32[4,32,8], index: 5, kind: input, shape index: {}]   ;;  %s1395_s6 = inlined_call_operand.vmem [shape: f32[8,16,8], index: 6, kind: output, shape index: {0}]   ;;  %s1396_s7 = inlined_call_operand.vmem [shape: f32[8,16,8], index: 7, kind: output, shape index: {1}]   ;;  %s1397_s8 = inlined_call_operand.vmem [shape: f32[8,16,8], index: 8, kind: output, shape index: {2}]  }
   0x1   :  { %1398 = sst [smem:[#allocation4_spill]] %s1389_s0  ;;  %s1273_s29 = smov 0  }
   0x2   :  { %s1275_s30 = smov 0   ;;  %s1277_s9 = smov 0  }
   0x3 LB: > { %s31_s10 = sadd.s32 1, %s1214_s29  ;;  %s38_s11 = sadd.s32 1, %s1218_s30  ;;  %s1222_s9 = sphi %s1277_s9, %s19_s9   ;;  %s1218_s30 = sphi %s1275_s30, %s1405_s30   ;;  %s1214_s29 = sphi %s1273_s29, %s1404_s29   ;;  %s1210_s28 = sphi %s1271_s28, %s1403_s28   ;;  %s1206_s27 = sphi %s1269_s27, %s1402_s27  }
   0x4   : > { %p32_p0 = scmp.ge.s32.totalorder %s31_s10, 4  ;;  %p1053_p1 = scmp.ge.s32.totalorder %s1222_s9, 1 }
   0x5   : > { %p341_p2 = scmp.lt.s32.totalorder %s1222_s9, 9 }
   0x6   : > { %s1407_s10 = smov (%p32_p0, %s31_s10), 0  ;;  %s1409_s11 = smov (!%p32_p0, %s38_s11), %s1218_s30 }
   0x7   : > { %p342_p3 = pnand %p1053_p1, %p341_p2  ;;  %p40_p4 = scmp.ge.s32.totalorder %s1409_s11, 2 }
   0x8   : > { %p423_p5 = scmp.lt.s32.totalorder (!%p342_p3), %s1210_s28, 1  ;;  %p432_p6 = scmp.lt.s32.totalorder (!%p342_p3), %s1206_s27, 3 }
   0x9   : > { %s1411_s11 = smov (%p40_p4, %s1409_s11), 0  ;;  %345 = sbr.rel (%p342_p3) target bundleno = 553 (0x229), region = 44 }
   0xa   : > { %1399 = sst [smem:[#allocation3_spill]] %s1411_s11  ;;  %s1062_s12 = sshll.u32 (!%p342_p3), %s1210_s28, 2 }
   0xb   : > { %s448_s15 = sadd.s32 (!%p342_p3), %s1206_s27, %s1062_s12  ;;  %s1400_s0 = sld [smem:[#allocation4_spill]] (!%p342_p3) }
   0xc   : > { %p450_p7 = scmp.lt.s32.totalorder (!%p342_p3), %s448_s15, 7  ;;  %p1071_p8 = scmp.ne.s32.totalorder (!%p342_p3), %s1206_s27, 0 }
   0xe   : > { %s1413_s28 = smov (!%p423_p5, %s1210_s28), 1  ;;  %s1415_s15 = smov (!%p450_p7, %s448_s15), 7 }
   0xf   : > { %s433_s13 = scalar_select %p432_p6, %s1206_s27, 3 }
  0x10   : > { %s1082_s14 = sshll.u32 %s1413_s28, 4  ;;  %s1086_s12 = sshll.u32 %s1415_s15, 4 }
  0x11   : > { %s430_s18 = scalar_lea.vmem %s1400_s0, %s1082_s14  ;;  %s1083_s19 = sshll.u32 %s433_s13, 5 }
  0x12   : > { %s1310_s22 = scalar_lea.vmem %s1392_s3, %s1083_s19  ;;  %s1315_s25 = scalar_lea.vmem %s1393_s4, %s1083_s19 }
  0x13   : > { %s1320_s28 = scalar_lea.vmem %s1394_s5, %s1083_s19  ;;  %s1325_s16 = scalar_lea.vmem %s1395_s6, %s1086_s12 }
  0x14   : > { %s1330_s21 = scalar_lea.vmem %s1396_s7, %s1086_s12  ;;  %s1335_s0 = scalar_lea.vmem %s1397_s8, %s1086_s12 }
  0x15   : > { %492 = sbr.rel (%p1071_p8) target bundleno = 340 (0x154), region = 48 }
  0x1a   : > { %v493_v0 = vld [vmem:[%s430_s18] sm:$0xff]  ;;  %vm497_vm0 = vcmask 261120   ;;  %v494_v1 = vld [vmem:[%s430_s18 + $0x8] sm:$0xff] }
  0x1b   : > { %v498_v2 = vsel %vm497_vm0, %v493_v0, 0.0  ;;  %v501_v3 = vsel %vm497_vm0, %v494_v1, 0.0  ;;  %v1072_v21 = vld [vmem:[%s1390_s1] ss:$0 sm:$0xff] }
  0x1c   : > { %499 = vadd.xlane.f32.xlu0 %v498_v2  ;;  %v1073_v23 = vld [vmem:[%s1391_s2] ss:$0 sm:$0xff] }
  0x20   : > { %502 = vadd.xlane.f32.xlu0 %v501_v3 }
  0xa5   : > { %v500_v4 = vpop.xlane.xlu0 %499 }
  0xa6   : > { %v505_v5 = vmul.f32 0.03125, %v500_v4 }
  0xa8   : > { %v507_v6 = vsub.f32 %v493_v0, %v505_v5 }
  0xa9   : > { %v503_v7 = vpop.xlane.xlu0 %502 }
  0xaa   : > { %v506_v8 = vmul.f32 0.03125, %v503_v7  ;;  %v509_v9 = vmul.f32 %v507_v6, %v507_v6 }
  0xac   : > { %v508_v10 = vsub.f32 %v494_v1, %v506_v8  ;;  %v511_v11 = vsel %vm497_vm0, %v509_v9, 0.0 }
  0xad   : > { %512 = vadd.xlane.f32.xlu1 %v511_v11 }
  0xae   : > { %v510_v12 = vmul.f32 %v508_v10, %v508_v10 }
  0xb0   : > { %v514_v13 = vsel %vm497_vm0, %v510_v12, 0.0 }
  0xb1   : > { %515 = vadd.xlane.f32.xlu1 %v514_v13 }
 0x136   : > { %v513_v14 = vpop.xlane.xlu1 %512 }
 0x137   : > { %v517_v15 = vmul.f32 0.03125, %v513_v14 }
 0x139   : > { %v519_v16 = vadd.f32 1e-05, %v517_v15 }
 0x13a   : > { %v516_v17 = vpop.xlane.xlu1 %515 }
 0x13b   : > { %1180 = vrsqrt.f32 %v519_v16  ;;  %v518_v18 = vmul.f32 0.03125, %v516_v17 }
 0x13d   : > { %v520_v19 = vadd.f32 1e-05, %v518_v18 }
 0x13f   : > { %1182 = vrsqrt.f32 %v520_v19 }
 0x148   : > { %v1181_v20 = vpop.eup %1180 }
 0x149   : > { %v523_v22 = vmul.f32 %v1181_v20, %v507_v6 }
 0x14b   : > { %v531_v24 = vmul.f32 %v1072_v21, %v523_v22 }
 0x14c   : > { %v1183_v25 = vpop.eup %1182 }
 0x14d   : > { %v539_v26 = vadd.f32 %v1073_v23, %v531_v24  ;;  %v524_v27 = vmul.f32 %v1183_v25, %v508_v10 }
 0x14f   : > { %541 = vst.msk [vmem:[#allocation2] sm:$0xff] %vm497_vm0, %v539_v26  ;;  %v532_v28 = vmul.f32 %v1072_v21, %v524_v27 }
 0x151   : > { %v540_v29 = vadd.f32 %v1073_v23, %v532_v28 }
 0x153   : > { %542 = vst.msk [vmem:[#allocation2 + $0x8] sm:$0xff] %vm497_vm0, %v540_v29 }
 0x154 PF: > { %v548_v30 = vld [vmem:[%s1310_s22 + $0x18] sm:$0xff]  ;;  %v547_v31 = vld [vmem:[%s1310_s22 + $0x10] sm:$0xff]  ;;  %vm549_vm1 = vcmask 261120   ;;  %v546_v34 = vld [vmem:[%s1310_s22 + $0x8] sm:$0xff]  ;;  %vm631_vm2 = vcmask 64512  }
 0x155   : > { %1107 = vmatprep.subr.mxu0 %v548_v30  ;;  %v637_v32 = vld [vmem:[%s1315_s25 + $0x18] sm:$0xff]  ;;  %v636_v35 = vld [vmem:[%s1315_s25 + $0x10] sm:$0xff]  ;;  %v545_v36 = vld [vmem:[%s1310_s22] sm:$0xff] }
 0x156   : > { %v543_v33 = vld [vmem:[#allocation2] sm:$0xff]  ;;  %1108 = vmatpush3.msra.mxu0 %v548_v30  ;;  %1118 = vmatprep.subr.mxu1 %v637_v32  ;;  %v635_v37 = vld [vmem:[%s1315_s25 + $0x8] sm:$0xff]  ;;  %v718_v39 = vld [vmem:[%s1320_s28 + $0x18] sm:$0xff] }
 0x157   : > { %1109 = vmatprep.subr.mxu0 %v547_v31  ;;  %1115 = vmatprep.mubr.msk.f32.mxu0 %vm549_vm1, %v543_v33  ;;  %v634_v40 = vld [vmem:[%s1315_s25] sm:$0xff]  ;;  %v717_v41 = vld [vmem:[%s1320_s28 + $0x10] sm:$0xff]  ;;  %v716_v42 = vld [vmem:[%s1320_s28 + $0x8] sm:$0xff] }
 0x158   : > { %1110 = vmatpush3.msra.mxu0 %v547_v31  ;;  %1119 = vmatpush3.msra.mxu1 %v637_v32  ;;  %v715_v43 = vld [vmem:[%s1320_s28] sm:$0xff] }
 0x159   : > { %1111 = vmatprep.subr.mxu0 %v546_v34  ;;  %1120 = vmatprep.subr.mxu1 %v636_v35 }
 0x15a   : > { %1112 = vmatpush3.msra.mxu0 %v546_v34  ;;  %v544_v38 = vld [vmem:[#allocation2 + $0x8] sm:$0xff]  ;;  %1121 = vmatpush3.msra.mxu1 %v636_v35 }
 0x15b   : > { %1113 = vmatprep.subr.mxu0 %v545_v36  ;;  %1122 = vmatprep.subr.mxu1 %v635_v37 }
 0x15c   : > { %1114 = vmatpush3.msra.mxu0 %v545_v36  ;;  %1123 = vmatpush3.msra.mxu1 %v635_v37 }
 0x15d   : > { %1116 = vmatmul.mubr.msk.f32.vlgmr.msra.gmra.mxu0 %vm549_vm1, %v544_v38  ;;  %1129 = vmatprep.subr.mxu0 %v718_v39 }
 0x15e   : > { %1130 = vmatpush3.msra.mxu0 %v718_v39  ;;  %1124 = vmatprep.subr.mxu1 %v634_v40 }
 0x15f   : > { %1131 = vmatprep.subr.mxu0 %v717_v41  ;;  %1125 = vmatpush3.msra.mxu1 %v634_v40 }
 0x160   : > { %1132 = vmatpush3.msra.mxu0 %v717_v41  ;;  %1126 = vmatprep.mubr.msk.f32.mxu1 %vm549_vm1, %v543_v33 }
 0x161   : > { %1133 = vmatprep.subr.mxu0 %v716_v42  ;;  %1127 = vmatmul.mubr.msk.f32.vlgmr.msra.gmra.mxu1 %vm549_vm1, %v544_v38 }
 0x162   : > { %1134 = vmatpush3.msra.mxu0 %v716_v42  ;;  %1137 = vmatprep.mubr.msk.f32.mxu0 %vm549_vm1, %v543_v33 }
 0x163   : > { %1135 = vmatprep.subr.mxu0 %v715_v43 }
 0x164   : > { %1136 = vmatpush3.msra.mxu0 %v715_v43 }
 0x165   : > { %1138 = vmatmul.mubr.msk.f32.vlgmr.msra.gmra.mxu0 %vm549_vm1, %v544_v38 }
 0x21d   : > { %v1117_v44 = vpop.f32.mrf.mxu0 }
 0x21e   : > { %633 = vst.msk [vmem:[%s1325_s16 + $0x8] sm:$0xff] %vm631_vm2, %v1117_v44 }
 0x21f   : > { %v622_v45 = vpop.f32.mrf.mxu0 }
 0x220   : > { %632 = vst.msk [vmem:[%s1325_s16] sm:$0xff] %vm631_vm2, %v622_v45 }
 0x221   : > { %v1128_v46 = vpop.f32.mrf.mxu1 }
 0x222   : > { %714 = vst.msk [vmem:[%s1330_s21 + $0x8] sm:$0xff] %vm631_vm2, %v1128_v46 }
 0x223   : > { %v704_v47 = vpop.f32.mrf.mxu1 }
 0x224   : > { %713 = vst.msk [vmem:[%s1330_s21] sm:$0xff] %vm631_vm2, %v704_v47 }
 0x225   : > { %v1139_v48 = vpop.f32.mrf.mxu0 }
 0x226   : > { %795 = vst.msk [vmem:[%s1335_s0 + $0x8] sm:$0xff] %vm631_vm2, %v1139_v48 }
 0x227   : > { %v785_v49 = vpop.f32.mrf.mxu0 }
 0x228   : > { %794 = vst.msk [vmem:[%s1335_s0] sm:$0xff] %vm631_vm2, %v785_v49 }
 0x229 PF: > { %s19_s9 = sadd.s32 1, %s1222_s9   ;;  %s1401_s19 = sld [smem:[#allocation3_spill]] }
 0x22a   : > { %p16_p9 = scmp.ge.s32.totalorder %s19_s9, 10   ;;  %s1402_s27 = smov %s1214_s29 }
 0x22b   : > { %s1403_s28 = smov %s1218_s30  ;;  %s1404_s29 = smov %s1407_s10 }
 0x22c   :  { %18 = sbr.rel (!%p16_p9) target bundleno = 3 (0x3), region = 111 }
 0x22f   : > { %s1405_s30 = smov %s1401_s19 }

// kernel: basic_transformer_block.10
= control target key start
LH: loop header
LB: loop body
LE: loop exit
PB: predicated region body
PF: predicated region fallthrough
CT: control target
= control target key end

     0   :  { %s828_s12 = smov 0   ;;  %s830_s13 = smov 0   ;;  %s899_s0 = inlined_call_operand.vmem [shape: f32[8,16,8], index: 0, kind: input, shape index: {}]   ;;  %s900_s1 = inlined_call_operand.vmem [shape: f32[8,16,8], index: 1, kind: input, shape index: {}]   ;;  %s901_s2 = inlined_call_operand.vmem [shape: f32[8,16,8], index: 2, kind: input, shape index: {}]   ;;  %s902_s3 = inlined_call_operand.vmem [shape: f32[8,16,8], index: 3, kind: output, shape index: {}]  }
   0x1   :  { %s832_s14 = smov 0  }
   0x2 LB: > { %s32_s15 = sadd.s32 1, %s799_s13  ;;  %p697_p0 = scmp.ge.s32.totalorder %s803_s14, 1  ;;  %s803_s14 = sphi %s832_s14, %s13_s14   ;;  %s799_s13 = sphi %s830_s13, %s904_s13   ;;  %s795_s12 = sphi %s828_s12, %s903_s12  }
   0x3   : > { %p34_p1 = scmp.ge.s32.totalorder %s32_s15, 8  ;;  %p199_p2 = scmp.lt.s32.totalorder %s803_s14, 9 }
   0x5   : > { %s906_s15 = smov (%p34_p1, %s32_s15), 0  ;;  %p200_p3 = pnand %p697_p0, %p199_p2 }
   0x6   : > { %p250_p4 = scmp.lt.s32.totalorder (!%p200_p3), %s795_s12, 7 }
   0x7   : > { %203 = sbr.rel (%p200_p3) target bundleno = 796 (0x31c), region = 32 }
   0xc   : > { %s908_s12 = smov (!%p250_p4, %s795_s12), 7  ;;  %vm298_vm0 = vcmask 64512   ;;  %vm293_vm1 = vcmask 7168   ;;  %v805_v4 = vmov -inf   ;;  %vm395_vm2 = vcmask 130048  }
   0xd   : > { %s846_s16 = sshll.u32 %s908_s12, 4  ;;  %294 = vst.msk [vmem:[#allocation2] sm:$0xff] %vm293_vm1, %v805_v4  ;;  %295 = vst.msk [vmem:[#allocation2 + $0x8] sm:$0xff] %vm293_vm1, %v805_v4  ;;  %v806_v9 = vmov 0   ;;  %v807_v10 = vmov 0.0  }
   0xe   : > { %s267_s19 = scalar_lea.vmem %s900_s1, %s846_s16  ;;  %s257_s22 = scalar_lea.vmem %s899_s0, %s846_s16  ;;  %767 = vset.pattern.permute.xlu1 %v806_v9  ;;  %768 = vset.pattern.permute.xlu0 %v806_v9  ;;  %296 = vst.msk [vmem:[#allocation3] sm:$0xff] %vm293_vm1, %v807_v10  ;;  %297 = vst.msk [vmem:[#allocation3 + $0x8] sm:$0xff] %vm293_vm1, %v807_v10 }
   0xf   : > { %v303_v0 = vld [vmem:[%s267_s19] sm:$0xff]  ;;  %v304_v1 = vld [vmem:[%s267_s19 + $0x8] sm:$0xff]  ;;  %299 = vst.msk [vmem:[#allocation4] sm:$0xff] %vm298_vm0, %v807_v10  ;;  %300 = vst.msk [vmem:[#allocation4 + $0x8] sm:$0xff] %vm298_vm0, %v807_v10  ;;  %s277_s25 = scalar_lea.vmem %s901_s2, %s846_s16  ;;  %s287_s28 = scalar_lea.vmem %s902_s3, %s846_s16 }
  0x10   : > { %726 = vmatprep.subr.msk.mxu0 %vm298_vm0, %v304_v1  ;;  %v301_v2 = vld [vmem:[%s257_s22] sm:$0xff]  ;;  %v302_v3 = vld [vmem:[%s257_s22 + $0x8] sm:$0xff] }
  0x11   : > { %727 = vmatpush3.xpose.msk.msra.mxu0 %vm298_vm0, %v304_v1  ;;  %730 = vmatprep.mubr.msk.f32.mxu0 %vm298_vm0, %v301_v2  ;;  %v456_v19 = vld [vmem:[%s277_s25 + $0x8] sm:$0xff]  ;;  %v455_v20 = vld [vmem:[%s277_s25] sm:$0xff] }
  0x12   : > { %728 = vmatprep.subr.msk.mxu0 %vm298_vm0, %v303_v0  ;;  %733 = vmatprep.subr.mxu1 %v456_v19 }
  0x13   : > { %734 = vmatpush3.msra.mxu1 %v456_v19 }
  0x14   : > { %v393_v11 = vld [vmem:[#allocation2] sm:$0xff]  ;;  %v394_v14 = vld [vmem:[#allocation2 + $0x8] sm:$0xff]  ;;  %735 = vmatprep.subr.mxu1 %v455_v20 }
  0x15   : > { %729 = vmatpush3.xpose.msk.msra.mxu0 %vm298_vm0, %v303_v0  ;;  %736 = vmatpush3.msra.mxu1 %v455_v20  ;;  %v426_v34 = vld [vmem:[#allocation3] sm:$0xff]  ;;  %v427_v38 = vld [vmem:[#allocation3 + $0x8] sm:$0xff] }
  0x16   : > { %v441_v45 = vld [vmem:[#allocation4] sm:$0xff]  ;;  %v442_v52 = vld [vmem:[#allocation4 + $0x8] sm:$0xff] }
  0x18   : > { %731 = vmatmul.mubr.msk.f32.vlgmr.msra.gmra.mxu0 %vm298_vm0, %v302_v3 }
  0xd8   : > { %v732_v5 = vpop.f32.mrf.mxu0 }
  0xd9   : > { %v399_v8 = vsel %vm395_vm2, %v732_v5, -inf }
  0xda   : > { %v384_v6 = vpop.f32.mrf.mxu0 }
  0xdb   : > { %v396_v7 = vsel %vm395_vm2, %v384_v6, -inf }
  0xdc   : > { %397 = vmax.xlane.f32.xlu0 %v396_v7 }
  0xe0   : > { %400 = vmax.xlane.f32.xlu0 %v399_v8 }
 0x165   : > { %v398_v12 = vpop.xlane.xlu0 %397 }
 0x166   : > { %v402_v13 = vmax.f32 %v393_v11, %v398_v12 }
 0x168   : > { %v404_v15 = vsub.f32 %v393_v11, %v402_v13  ;;  %542 = vst.msk [vmem:[#allocation2] sm:$0xff] %vm293_vm1, %v402_v13  ;;  %412 = vperm.xlu1 %767, %v402_v13  }
 0x169   : > { %v401_v16 = vpop.xlane.xlu0 %400 }
 0x16a   : > { %v403_v17 = vmax.f32 %v394_v14, %v401_v16  ;;  %v406_v31 = vmul.f32 1.442695, %v404_v15 }
 0x16c   : > { %v405_v18 = vsub.f32 %v394_v14, %v403_v17  ;;  %543 = vst.msk [vmem:[#allocation2 + $0x8] sm:$0xff] %vm293_vm1, %v403_v17  ;;  %417 = vperm.xlu1 %767, %v403_v17  }
 0x16e   : > { %v408_v33 = vmul.f32 1.442695, %v405_v18 }
 0x1e3   : > { %v413_v21 = vpop.permute.xlu1 %412 }
 0x1e4   : > { %v420_v22 = vsub.f32 %v384_v6, %v413_v21 }
 0x1e6   : > { %v422_v23 = vmul.f32 1.442695, %v420_v22 }
 0x1e7   : > { %v418_v24 = vpop.permute.xlu1 %417 }
 0x1e8   : > { %769 = vpow2.f32 %v422_v23  ;;  %v421_v25 = vsub.f32 %v732_v5, %v418_v24 }
 0x1ea   : > { %v424_v26 = vmul.f32 1.442695, %v421_v25 }
 0x1ec   : > { %771 = vpow2.f32 %v424_v26 }
 0x1ed   : > { %773 = vpow2.f32 %v406_v31 }
 0x1ee   : > { %775 = vpow2.f32 %v408_v33 }
 0x1f5   : > { %v770_v27 = vpop.eup %769 }
 0x1f6   : > { %737 = vmatprep.mubr.msk.f32.mxu1 %vm395_vm2, %v770_v27  ;;  %v430_v28 = vsel %vm395_vm2, %v770_v27, 0.0 }
 0x1f7   : > { %431 = vadd.xlane.f32.xlu0 %v430_v28 }
 0x1f9   : > { %v772_v29 = vpop.eup %771 }
 0x1fa   : > { %738 = vmatmul.mubr.msk.f32.vlgmr.msra.gmra.mxu1 %vm395_vm2, %v772_v29  ;;  %v433_v30 = vsel %vm395_vm2, %v772_v29, 0.0  ;;  %v774_v32 = vpop.eup %773 }
 0x1fb   : > { %434 = vadd.xlane.f32.xlu1 %v433_v30  ;;  %v428_v35 = vmul.f32 %v774_v32, %v426_v34  ;;  %v776_v36 = vpop.eup %775 }
 0x1fc   : > { %v429_v40 = vmul.f32 %v776_v36, %v427_v38 }
 0x20d   : > { %445 = vperm.xlu0 %768, %v774_v32  }
 0x280   : > { %v432_v37 = vpop.xlane.xlu0 %431 }
 0x281   : > { %v436_v39 = vadd.f32 %v432_v37, %v428_v35 }
 0x283   : > { %439 = vst.msk [vmem:[#allocation3] sm:$0xff] %vm293_vm1, %v436_v39 }
 0x284   : > { %v435_v41 = vpop.xlane.xlu1 %434 }
 0x285   : > { %v437_v42 = vadd.f32 %v435_v41, %v429_v40 }
 0x287   : > { %440 = vst.msk [vmem:[#allocation3 + $0x8] sm:$0xff] %vm293_vm1, %v437_v42 }
 0x288   : > { %v446_v46 = vpop.permute.xlu0 %445 }
 0x289   : > { %v453_v48 = vmul.f32 %v446_v46, %v441_v45 }
 0x28a   : > { %v549_v43 = vld [vmem:[#allocation3] sm:$0xff] }
 0x28b   : > { %553 = vperm.xlu0 %768, %v549_v43  }
 0x28e   : > { %v550_v44 = vld [vmem:[#allocation3 + $0x8] sm:$0xff] }
 0x28f   : > { %558 = vperm.xlu1 %767, %v550_v44   ;;  %450 = vperm.xlu0 %768, %v776_v36  }
 0x2ba   : > { %v739_v47 = vpop.f32.mrf.mxu1 }
 0x2bc   : > { %v529_v49 = vpop.f32.mrf.mxu1 }
 0x2bd   : > { %v538_v50 = vadd.f32 %v529_v49, %v453_v48 }
 0x2bf   : > { %540 = vst.msk [vmem:[#allocation4] sm:$0xff] %vm298_vm0, %v538_v50 }
 0x2c6   : > { %v547_v58 = vld [vmem:[#allocation4] sm:$0xff] }
 0x306   : > { %v554_v51 = vpop.permute.xlu0 %553 }
 0x307   : > { %777 = vrcp.f32 %v554_v51 }
 0x30a   : > { %v559_v53 = vpop.permute.xlu1 %558  ;;  %v451_v54 = vpop.permute.xlu0 %450 }
 0x30b   : > { %779 = vrcp.f32 %v559_v53  ;;  %v454_v55 = vmul.f32 %v451_v54, %v442_v52 }
 0x30d   : > { %v539_v56 = vadd.f32 %v739_v47, %v454_v55 }
 0x30f   : > { %541 = vst.msk [vmem:[#allocation4 + $0x8] sm:$0xff] %vm298_vm0, %v539_v56 }
 0x314   : > { %v778_v57 = vpop.eup %777 }
 0x315   : > { %v562_v59 = vmul.f32 %v778_v57, %v547_v58 }
 0x316   : > { %v548_v61 = vld [vmem:[#allocation4 + $0x8] sm:$0xff] }
 0x317   : > { %565 = vst.msk [vmem:[%s287_s28] sm:$0xff] %vm298_vm0, %v562_v59 }
 0x318   : > { %v780_v60 = vpop.eup %779 }
 0x319   : > { %v564_v62 = vmul.f32 %v780_v60, %v548_v61 }
 0x31b   : > { %566 = vst.msk [vmem:[%s287_s28 + $0x8] sm:$0xff] %vm298_vm0, %v564_v62 }
 0x31c PF: > { %s13_s14 = sadd.s32 1, %s803_s14   ;;  %s903_s12 = smov %s799_s13 }
 0x31d   : > { %p10_p5 = scmp.ge.s32.totalorder %s13_s14, 10   ;;  %s904_s13 = smov %s906_s15 }
 0x31f   :  { %12 = sbr.rel (!%p10_p5) target bundleno = 2 (0x2), region = 76 }

// kernel: basic_transformer_block.11
= control target key start
LH: loop header
LB: loop body
LE: loop exit
PB: predicated region body
PF: predicated region fallthrough
CT: control target
= control target key end

     0   :  { %s694_s15 = smov 0   ;;  %s696_s16 = smov 0   ;;  %s773_s0 = inlined_call_operand.vmem [shape: f32[8,16,8], index: 0, kind: input, shape index: {}]   ;;  %s774_s1 = inlined_call_operand.vmem [shape: f32[4,8,32], index: 1, kind: input, shape index: {}]   ;;  %s775_s2 = inlined_call_operand.vmem [shape: f32[1,32], index: 2, kind: input, shape index: {}]   ;;  %s776_s3 = inlined_call_operand.vmem [shape: f32[2,16,32], index: 3, kind: input, shape index: {}]   ;;  %s777_s4 = inlined_call_operand.vmem [shape: f32[2,16,32], index: 4, kind: output, shape index: {}]  }
   0x1   :  { %s698_s17 = smov 0   ;;  %s700_s18 = smov 0  }
   0x2   :  { %s702_s19 = smov 0  }
   0x3 LB: > { %s26_s20 = sadd.s32 1, %s658_s17  ;;  %s33_s21 = sadd.s32 1, %s662_s18  ;;  %s666_s19 = sphi %s702_s19, %s14_s19   ;;  %s662_s18 = sphi %s700_s18, %s781_s18   ;;  %s658_s17 = sphi %s698_s17, %s780_s17   ;;  %s654_s16 = sphi %s696_s16, %s779_s16   ;;  %s650_s15 = sphi %s694_s15, %s778_s15  }
   0x4   : > { %p27_p0 = scmp.ge.s32.totalorder %s26_s20, 4  ;;  %p560_p1 = scmp.ge.s32.totalorder %s666_s19, 1 }
   0x5   : > { %p224_p2 = scmp.lt.s32.totalorder %s666_s19, 9 }
   0x6   : > { %s783_s20 = smov (%p27_p0, %s26_s20), 0  ;;  %s785_s21 = smov (!%p27_p0, %s33_s21), %s662_s18 }
   0x7   : > { %p225_p3 = pnand %p560_p1, %p224_p2  ;;  %p35_p4 = scmp.ge.s32.totalorder %s785_s21, 2 }
   0x8   : > { %s561_s22 = sshll.u32 (!%p225_p3), %s654_s16, 2  ;;  %p287_p5 = scmp.lt.s32.totalorder (!%p225_p3), %s650_s15, 3 }
   0x9   : > { %s787_s21 = smov (%p35_p4, %s785_s21), 0  ;;  %228 = sbr.rel (%p225_p3) target bundleno = 238 (0xee), region = 36 }
   0xa   : > { %s274_s23 = sadd.s32 (!%p225_p3), %s650_s15, %s561_s22  ;;  %p292_p7 = scmp.lt.s32.totalorder (!%p225_p3), %s654_s16, 1 }
   0xb   : > { %p276_p6 = scmp.lt.s32.totalorder (!%p225_p3), %s274_s23, 7  ;;  %p569_p8 = scmp.ne.s32.totalorder (!%p225_p3), %s650_s15, 0 }
   0xe   : > { %s288_s24 = scalar_select %p287_p5, %s650_s15, 3 }
   0xf   : > { %s789_s23 = smov (!%p276_p6, %s274_s23), 7  ;;  %s791_s16 = smov (!%p292_p7, %s654_s16), 1 }
  0x10   : > { %s564_s25 = sshll.u32 %s288_s24, 3  ;;  %s576_s26 = sshll.u32 %s789_s23, 4 }
  0x11   : > { %s290_s29 = scalar_lea.vmem %s774_s1, %s564_s25  ;;  %s283_s6 = scalar_lea.vmem %s773_s0, %s576_s26 }
  0x12   : > { %s577_s7 = sshll.u32 %s791_s16, 4  ;;  %314 = sbr.rel (%p569_p8) target bundleno = 25 (0x19), region = 40 }
  0x13   : > { %s738_s10 = scalar_lea.vmem %s776_s3, %s577_s7  ;;  %s743_s13 = scalar_lea.vmem %s777_s4, %s577_s7 }
  0x17   : > { %vm315_vm0 = vcmask 261120   ;;  %v668_v0 = vmov 0.0  }
  0x18   : > { %316 = vst.msk [vmem:[#allocation2] sm:$0xff] %vm315_vm0, %v668_v0  ;;  %317 = vst.msk [vmem:[#allocation2 + $0x8] sm:$0xff] %vm315_vm0, %v668_v0 }
  0x19 PF: > { %v322_v1 = vld [vmem:[%s290_s29] sm:$0xff]  ;;  %vm323_vm1 = vcmask 64512   ;;  %v321_v3 = vld [vmem:[%s283_s6 + $0x8] sm:$0xff]  ;;  %vm407_vm2 = vcmask 261120   ;;  %p572_p9 = scmp.ne.s32.totalorder %s650_s15, 3 }
  0x1a   : > { %v320_v2 = vld [vmem:[%s283_s6] sm:$0xff]  ;;  %582 = vmatprep.subr.mxu0 %v322_v1 }
  0x1b   : > { %584 = vmatprep.mubr.msk.f32.mxu0 %vm323_vm1, %v320_v2  ;;  %583 = vmatpush3.msra.mxu0 %v322_v1 }
  0x1c   : > { %585 = vmatmul.mubr.msk.f32.vlgmr.msra.gmra.mxu0 %vm323_vm1, %v321_v3 }
  0x1f   : > { %v319_v4 = vld [vmem:[#allocation2 + $0x8] sm:$0xff]  ;;  %v318_v6 = vld [vmem:[#allocation2] sm:$0xff] }
  0xdc   : > { %v586_v5 = vpop.f32.mrf.mxu0 }
  0xdd   : > { %v406_v7 = vadd.f32 %v586_v5, %v319_v4  ;;  %413 = sbr.rel (%p572_p9) target bundleno = 238 (0xee), region = 44 }
  0xde   : > { %v396_v8 = vpop.f32.mrf.mxu0 }
  0xdf   : > { %409 = vst.msk [vmem:[#allocation2 + $0x8] sm:$0xff] %vm407_vm2, %v406_v7  ;;  %v405_v9 = vadd.f32 %v396_v8, %v318_v6 }
  0xe1   : > { %408 = vst.msk [vmem:[#allocation2] sm:$0xff] %vm407_vm2, %v405_v9 }
  0xe2   : > { %v573_v11 = vld [vmem:[%s775_s2] ss:$0 sm:$0xff]  ;;  %v426_v15 = vld [vmem:[%s738_s10 + $0x8] sm:$0xff] }
  0xe3   : > { %v425_v12 = vld [vmem:[%s738_s10] sm:$0xff] }
  0xe6   : > { %v415_v14 = vld [vmem:[#allocation2 + $0x8] sm:$0xff] }
  0xe7   : > { %v424_v16 = vadd.f32 %v573_v11, %v415_v14 }
  0xe8   : > { %v414_v10 = vld [vmem:[#allocation2] sm:$0xff] }
  0xe9   : > { %v423_v13 = vadd.f32 %v573_v11, %v414_v10  ;;  %v428_v18 = vadd.f32 %v426_v15, %v424_v16 }
  0xeb   : > { %v427_v17 = vadd.f32 %v425_v12, %v423_v13  ;;  %430 = vst.msk [vmem:[%s743_s13 + $0x8] sm:$0xff] %vm407_vm2, %v428_v18 }
  0xed   : > { %429 = vst.msk [vmem:[%s743_s13] sm:$0xff] %vm407_vm2, %v427_v17 }
  0xee PF: > { %s14_s19 = sadd.s32 1, %s666_s19   ;;  %s778_s15 = smov %s658_s17 }
  0xef   : > { %p11_p10 = scmp.ge.s32.totalorder %s14_s19, 10   ;;  %s779_s16 = smov %s662_s18 }
  0xf0   : > { %s780_s17 = smov %s783_s20  ;;  %s781_s18 = smov %s787_s21 }
  0xf1   :  { %13 = sbr.rel (!%p11_p10) target bundleno = 3 (0x3), region = 80 }

// kernel: basic_transformer_block.12
= control target key start
LH: loop header
LB: loop body
LE: loop exit
PB: predicated region body
PF: predicated region fallthrough
CT: control target
= control target key end

     0   :  { %s680_s15 = smov 0   ;;  %s682_s16 = smov 0   ;;  %s762_s0 = inlined_call_operand.vmem [shape: f32[2,16,32], index: 0, kind: input, shape index: {}]   ;;  %s763_s1 = inlined_call_operand.vmem [shape: f32[1,32], index: 1, kind: input, shape index: {}]   ;;  %s764_s2 = inlined_call_operand.vmem [shape: f32[1,32], index: 2, kind: input, shape index: {}]   ;;  %s765_s3 = inlined_call_operand.vmem [shape: f32[4,32,8], index: 3, kind: input, shape index: {}]   ;;  %s766_s4 = inlined_call_operand.vmem [shape: f32[8,16,8], index: 4, kind: output, shape index: {}]  }
   0x1   :  { %s684_s17 = smov 0   ;;  %s686_s18 = smov 0  }
   0x2   :  { %s688_s19 = smov 0  }
   0x3 LB: > { %s26_s20 = sadd.s32 1, %s645_s17  ;;  %s33_s21 = sadd.s32 1, %s649_s18  ;;  %s653_s19 = sphi %s688_s19, %s14_s19   ;;  %s649_s18 = sphi %s686_s18, %s770_s18   ;;  %s645_s17 = sphi %s684_s17, %s769_s17   ;;  %s641_s16 = sphi %s682_s16, %s768_s16   ;;  %s637_s15 = sphi %s680_s15, %s767_s15  }
   0x4   : > { %p27_p0 = scmp.ge.s32.totalorder %s26_s20, 4  ;;  %p536_p1 = scmp.ge.s32.totalorder %s653_s19, 1 }
   0x5   : > { %p204_p2 = scmp.lt.s32.totalorder %s653_s19, 9 }
   0x6   : > { %s772_s20 = smov (%p27_p0, %s26_s20), 0  ;;  %s774_s21 = smov (!%p27_p0, %s33_s21), %s649_s18 }
   0x7   : > { %p205_p3 = pnand %p536_p1, %p204_p2  ;;  %p35_p4 = scmp.ge.s32.totalorder %s774_s21, 2 }
   0x8   : > { %p246_p5 = scmp.lt.s32.totalorder (!%p205_p3), %s641_s16, 1  ;;  %p255_p6 = scmp.lt.s32.totalorder (!%p205_p3), %s637_s15, 3 }
   0x9   : > { %s776_s21 = smov (%p35_p4, %s774_s21), 0  ;;  %208 = sbr.rel (%p205_p3) target bundleno = 543 (0x21f), region = 36 }
   0xa   : > { %s541_s22 = sshll.u32 (!%p205_p3), %s641_s16, 2  ;;  %p544_p8 = scmp.ne.s32.totalorder (!%p205_p3), %s637_s15, 0 }
   0xb   : > { %s261_s25 = sadd.s32 (!%p205_p3), %s637_s15, %s541_s22 }
   0xc   : > { %p263_p7 = scmp.lt.s32.totalorder (!%p205_p3), %s261_s25, 7 }
   0xe   : > { %s778_s16 = smov (!%p246_p5, %s641_s16), 1  ;;  %s780_s25 = smov (!%p263_p7, %s261_s25), 7 }
   0xf   : > { %s256_s23 = scalar_select %p255_p6, %s637_s15, 3 }
  0x10   : > { %s551_s24 = sshll.u32 %s778_s16, 4  ;;  %s553_s7 = sshll.u32 %s780_s25, 4 }
  0x11   : > { %s253_s28 = scalar_lea.vmem %s762_s0, %s551_s24  ;;  %s552_s29 = sshll.u32 %s256_s23, 5 }
  0x12   : > { %s721_s6 = scalar_lea.vmem %s765_s3, %s552_s29  ;;  %s726_s10 = scalar_lea.vmem %s766_s4, %s553_s7 }
  0x13   : > { %277 = sbr.rel (%p544_p8) target bundleno = 338 (0x152), region = 40 }
  0x18   : > { %v278_v0 = vld [vmem:[%s253_s28] sm:$0xff]  ;;  %vm282_vm0 = vcmask 261120   ;;  %v279_v1 = vld [vmem:[%s253_s28 + $0x8] sm:$0xff] }
  0x19   : > { %v283_v2 = vsel %vm282_vm0, %v278_v0, 0.0  ;;  %v286_v3 = vsel %vm282_vm0, %v279_v1, 0.0  ;;  %v545_v21 = vld [vmem:[%s763_s1] ss:$0 sm:$0xff] }
  0x1a   : > { %284 = vadd.xlane.f32.xlu0 %v283_v2  ;;  %v546_v23 = vld [vmem:[%s764_s2] ss:$0 sm:$0xff] }
  0x1e   : > { %287 = vadd.xlane.f32.xlu0 %v286_v3 }
  0xa3   : > { %v285_v4 = vpop.xlane.xlu0 %284 }
  0xa4   : > { %v290_v5 = vmul.f32 0.03125, %v285_v4 }
  0xa6   : > { %v292_v6 = vsub.f32 %v278_v0, %v290_v5 }
  0xa7   : > { %v288_v7 = vpop.xlane.xlu0 %287 }
  0xa8   : > { %v291_v8 = vmul.f32 0.03125, %v288_v7  ;;  %v294_v9 = vmul.f32 %v292_v6, %v292_v6 }
  0xaa   : > { %v293_v10 = vsub.f32 %v279_v1, %v291_v8  ;;  %v296_v11 = vsel %vm282_vm0, %v294_v9, 0.0 }
  0xab   : > { %297 = vadd.xlane.f32.xlu1 %v296_v11 }
  0xac   : > { %v295_v12 = vmul.f32 %v293_v10, %v293_v10 }
  0xae   : > { %v299_v13 = vsel %vm282_vm0, %v295_v12, 0.0 }
  0xaf   : > { %300 = vadd.xlane.f32.xlu1 %v299_v13 }
 0x134   : > { %v298_v14 = vpop.xlane.xlu1 %297 }
 0x135   : > { %v302_v15 = vmul.f32 0.03125, %v298_v14 }
 0x137   : > { %v304_v16 = vadd.f32 1e-05, %v302_v15 }
 0x138   : > { %v301_v17 = vpop.xlane.xlu1 %300 }
 0x139   : > { %611 = vrsqrt.f32 %v304_v16  ;;  %v303_v18 = vmul.f32 0.03125, %v301_v17 }
 0x13b   : > { %v305_v19 = vadd.f32 1e-05, %v303_v18 }
 0x13d   : > { %613 = vrsqrt.f32 %v305_v19 }
 0x146   : > { %v612_v20 = vpop.eup %611 }
 0x147   : > { %v308_v22 = vmul.f32 %v612_v20, %v292_v6 }
 0x149   : > { %v316_v24 = vmul.f32 %v545_v21, %v308_v22 }
 0x14a   : > { %v614_v25 = vpop.eup %613 }
 0x14b   : > { %v324_v26 = vadd.f32 %v546_v23, %v316_v24  ;;  %v309_v27 = vmul.f32 %v614_v25, %v293_v10 }
 0x14d   : > { %326 = vst.msk [vmem:[#allocation2] sm:$0xff] %vm282_vm0, %v324_v26  ;;  %v317_v28 = vmul.f32 %v545_v21, %v309_v27 }
 0x14f   : > { %v325_v29 = vadd.f32 %v546_v23, %v317_v28 }
 0x151   : > { %327 = vst.msk [vmem:[#allocation2 + $0x8] sm:$0xff] %vm282_vm0, %v325_v29 }
 0x152 PF: > { %v333_v30 = vld [vmem:[%s721_s6 + $0x18] sm:$0xff]  ;;  %v332_v31 = vld [vmem:[%s721_s6 + $0x10] sm:$0xff]  ;;  %vm334_vm1 = vcmask 261120   ;;  %v331_v33 = vld [vmem:[%s721_s6 + $0x8] sm:$0xff]  ;;  %vm416_vm2 = vcmask 64512  }
 0x153   : > { %560 = vmatprep.subr.mxu0 %v333_v30  ;;  %v330_v34 = vld [vmem:[%s721_s6] sm:$0xff] }
 0x154   : > { %v328_v32 = vld [vmem:[#allocation2] sm:$0xff]  ;;  %561 = vmatpush3.msra.mxu0 %v333_v30 }
 0x155   : > { %568 = vmatprep.mubr.msk.f32.mxu0 %vm334_vm1, %v328_v32  ;;  %562 = vmatprep.subr.mxu0 %v332_v31 }
 0x156   : > { %563 = vmatpush3.msra.mxu0 %v332_v31 }
 0x157   : > { %564 = vmatprep.subr.mxu0 %v331_v33 }
 0x158   : > { %565 = vmatpush3.msra.mxu0 %v331_v33  ;;  %v329_v35 = vld [vmem:[#allocation2 + $0x8] sm:$0xff] }
 0x159   : > { %566 = vmatprep.subr.mxu0 %v330_v34 }
 0x15a   : > { %567 = vmatpush3.msra.mxu0 %v330_v34 }
 0x15b   : > { %569 = vmatmul.mubr.msk.f32.vlgmr.msra.gmra.mxu0 %vm334_vm1, %v329_v35 }
 0x21b   : > { %v570_v36 = vpop.f32.mrf.mxu0 }
 0x21c   : > { %418 = vst.msk [vmem:[%s726_s10 + $0x8] sm:$0xff] %vm416_vm2, %v570_v36 }
 0x21d   : > { %v407_v37 = vpop.f32.mrf.mxu0 }
 0x21e   : > { %417 = vst.msk [vmem:[%s726_s10] sm:$0xff] %vm416_vm2, %v407_v37 }
 0x21f PF: > { %s14_s19 = sadd.s32 1, %s653_s19   ;;  %s767_s15 = smov %s645_s17 }
 0x220   : > { %p11_p9 = scmp.ge.s32.totalorder %s14_s19, 10   ;;  %s768_s16 = smov %s649_s18 }
 0x221   : > { %s769_s17 = smov %s772_s20  ;;  %s770_s18 = smov %s776_s21 }
 0x222   :  { %13 = sbr.rel (!%p11_p9) target bundleno = 3 (0x3), region = 73 }

// kernel: basic_transformer_block.13
= control target key start
LH: loop header
LB: loop body
LE: loop exit
PB: predicated region body
PF: predicated region fallthrough
CT: control target
= control target key end

     0   :  { %s789_s15 = smov 0   ;;  %s791_s16 = smov 0   ;;  %s859_s0 = inlined_call_operand.vmem [shape: f32[2,8,32], index: 0, kind: input, shape index: {}]   ;;  %s860_s1 = inlined_call_operand.vmem [shape: f32[4,32,8], index: 1, kind: input, shape index: {}]   ;;  %s861_s2 = inlined_call_operand.vmem [shape: f32[4,32,8], index: 2, kind: input, shape index: {}]   ;;  %s862_s3 = inlined_call_operand.vmem [shape: f32[8,8,8], index: 3, kind: output, shape index: {0}]   ;;  %s863_s4 = inlined_call_operand.vmem [shape: f32[8,8,8], index: 4, kind: output, shape index: {1}]  }
   0x1   :  { %s793_s17 = smov 0   ;;  %s795_s18 = smov 0  }
   0x2   :  { %s797_s19 = smov 0  }
   0x3 LB: > { %s27_s20 = sadd.s32 1, %s752_s17  ;;  %s34_s21 = sadd.s32 1, %s756_s18  ;;  %s760_s19 = sphi %s797_s19, %s15_s19   ;;  %s756_s18 = sphi %s795_s18, %s867_s18   ;;  %s752_s17 = sphi %s793_s17, %s866_s17   ;;  %s748_s16 = sphi %s791_s16, %s865_s16   ;;  %s744_s15 = sphi %s789_s15, %s864_s15  }
   0x4   : > { %p28_p0 = scmp.ge.s32.totalorder %s27_s20, 4  ;;  %p632_p1 = scmp.ge.s32.totalorder %s760_s19, 1 }
   0x5   : > { %p220_p2 = scmp.lt.s32.totalorder %s760_s19, 9 }
   0x6   : > { %s869_s20 = smov (%p28_p0, %s27_s20), 0  ;;  %s871_s21 = smov (!%p28_p0, %s34_s21), %s756_s18 }
   0x7   : > { %p221_p3 = pnand %p632_p1, %p220_p2  ;;  %p36_p4 = scmp.ge.s32.totalorder %s871_s21, 2 }
   0x8   : > { %p278_p5 = scmp.lt.s32.totalorder (!%p221_p3), %s744_s15, 3  ;;  %p271_p6 = scmp.lt.s32.totalorder (!%p221_p3), %s748_s16, 1 }
   0x9   : > { %s873_s21 = smov (%p36_p4, %s871_s21), 0  ;;  %224 = sbr.rel (%p221_p3) target bundleno = 222 (0xde), region = 32 }
   0xa   : > { %s638_s9 = sshll.u32 (!%p221_p3), %s748_s16, 2 }
   0xb   : > { %s289_s10 = sadd.s32 (!%p221_p3), %s744_s15, %s638_s9 }
   0xc   : > { %p290_p7 = scmp.lt.s32.totalorder (!%p221_p3), %s289_s10, 7 }
   0xe   : > { %v762_v0 = vmov 0.0   ;;  %s279_s22 = scalar_select %p278_p5, %s744_s15, 3  ;;  %vm763_vm0 = vmmov 0   ;;  %vm315_vm1 = vcmask 261120   ;;  %vm389_vm2 = vcmask 64512  }
   0xf   : > { %658 = vmatprep.subr.mxu0 %v762_v0  ;;  %669 = vmatprep.subr.mxu1 %v762_v0  ;;  %s272_s23 = scalar_select %p271_p6, %s748_s16, 1 }
  0x10   : > { %666 = vmatprep.mubr.msk.f32.mxu0 %vm763_vm0, %v762_v0  ;;  %677 = vmatprep.mubr.msk.f32.mxu1 %vm763_vm0, %v762_v0  ;;  %s646_s24 = sshll.u32 %s279_s22, 5  ;;  %s875_s10 = smov (!%p290_p7, %s289_s10), 7 }
  0x11   : > { %s282_s27 = scalar_lea.vmem %s860_s1, %s646_s24  ;;  %s287_s30 = scalar_lea.vmem %s861_s2, %s646_s24 }
  0x12   : > { %v314_v1 = vld [vmem:[%s282_s27 + $0x18] sm:$0xff]  ;;  %v313_v3 = vld [vmem:[%s282_s27 + $0x10] sm:$0xff]  ;;  %s633_s5 = sshll.u32 %s272_s23, 3  ;;  %v312_v5 = vld [vmem:[%s282_s27 + $0x8] sm:$0xff]  ;;  %s639_s11 = sshll.u32 %s875_s10, 3 }
  0x13   : > { %v394_v2 = vld [vmem:[%s287_s30 + $0x18] sm:$0xff]  ;;  %659 = vmatpush3.msra.mxu0 %v314_v1  ;;  %v393_v4 = vld [vmem:[%s287_s30 + $0x10] sm:$0xff]  ;;  %v392_v6 = vld [vmem:[%s287_s30 + $0x8] sm:$0xff]  ;;  %s277_s8 = scalar_lea.vmem %s859_s0, %s633_s5  ;;  %s296_s14 = scalar_lea.vmem %s862_s3, %s639_s11 }
  0x14   : > { %670 = vmatpush3.msra.mxu1 %v394_v2  ;;  %660 = vmatprep.subr.mxu0 %v762_v0  ;;  %v311_v7 = vld [vmem:[%s282_s27] sm:$0xff]  ;;  %s307_s24 = scalar_lea.vmem %s863_s4, %s639_s11 }
  0x15   : > { %671 = vmatprep.subr.mxu1 %v762_v0  ;;  %661 = vmatpush3.msra.mxu0 %v313_v3  ;;  %v391_v8 = vld [vmem:[%s287_s30] sm:$0xff] }
  0x16   : > { %672 = vmatpush3.msra.mxu1 %v393_v4  ;;  %662 = vmatprep.subr.mxu0 %v762_v0  ;;  %v310_v9 = vld [vmem:[%s277_s8] sm:$0xff] }
  0x17   : > { %673 = vmatprep.subr.mxu1 %v762_v0  ;;  %663 = vmatpush3.msra.mxu0 %v312_v5 }
  0x18   : > { %674 = vmatpush3.msra.mxu1 %v392_v6  ;;  %664 = vmatprep.subr.mxu0 %v762_v0 }
  0x19   : > { %675 = vmatprep.subr.mxu1 %v762_v0  ;;  %665 = vmatpush3.msra.mxu0 %v311_v7 }
  0x1a   : > { %676 = vmatpush3.msra.mxu1 %v391_v8  ;;  %667 = vmatmul.mubr.msk.f32.vlgmr.msra.gmra.mxu0 %vm315_vm1, %v310_v9 }
  0x1b   : > { %678 = vmatmul.mubr.msk.f32.vlgmr.msra.gmra.mxu1 %vm315_vm1, %v310_v9 }
  0xda   : > { %v385_v10 = vpop.f32.mrf.mxu0 }
  0xdb   : > { %v461_v11 = vpop.f32.mrf.mxu1  ;;  %390 = vst.msk [vmem:[%s296_s14] sm:$0xff] %vm389_vm2, %v385_v10 }
  0xdc   : > { %465 = vst.msk [vmem:[%s307_s24] sm:$0xff] %vm389_vm2, %v461_v11  ;;  %v668_v12 = vpop.f32.mrf.mxu0 }
  0xdd   : > { %v679_v13 = vpop.f32.mrf.mxu1 }
  0xde PF: > { %s15_s19 = sadd.s32 1, %s760_s19   ;;  %s864_s15 = smov %s752_s17 }
  0xdf   : > { %p12_p8 = scmp.ge.s32.totalorder %s15_s19, 10   ;;  %s865_s16 = smov %s756_s18 }
  0xe0   : > { %s866_s17 = smov %s869_s20  ;;  %s867_s18 = smov %s873_s21 }
  0xe1   :  { %14 = sbr.rel (!%p12_p8) target bundleno = 3 (0x3), region = 80 }

// kernel: basic_transformer_block.14
= control target key start
LH: loop header
LB: loop body
LE: loop exit
PB: predicated region body
PF: predicated region fallthrough
CT: control target
= control target key end

     0   :  { %s789_s12 = smov 0   ;;  %s791_s13 = smov 0   ;;  %s864_s0 = inlined_call_operand.vmem [shape: f32[8,16,8], index: 0, kind: input, shape index: {}]   ;;  %s865_s1 = inlined_call_operand.vmem [shape: f32[8,8,8], index: 1, kind: input, shape index: {}]   ;;  %s866_s2 = inlined_call_operand.vmem [shape: f32[8,8,8], index: 2, kind: input, shape index: {}]   ;;  %s867_s3 = inlined_call_operand.vmem [shape: f32[8,16,8], index: 3, kind: output, shape index: {}]  }
   0x1   :  { %s793_s14 = smov 0  }
   0x2 LB: > { %s32_s15 = sadd.s32 1, %s760_s13  ;;  %p669_p0 = scmp.ge.s32.totalorder %s764_s14, 1  ;;  %s764_s14 = sphi %s793_s14, %s13_s14   ;;  %s760_s13 = sphi %s791_s13, %s869_s13   ;;  %s756_s12 = sphi %s789_s12, %s868_s12  }
   0x3   : > { %p34_p1 = scmp.ge.s32.totalorder %s32_s15, 8  ;;  %p193_p2 = scmp.lt.s32.totalorder %s764_s14, 9 }
   0x5   : > { %s871_s15 = smov (%p34_p1, %s32_s15), 0  ;;  %p194_p3 = pnand %p669_p0, %p193_p2 }
   0x6   : > { %p240_p4 = scmp.lt.s32.totalorder (!%p194_p3), %s756_s12, 7 }
   0x7   : > { %197 = sbr.rel (%p194_p3) target bundleno = 792 (0x318), region = 32 }
   0xc   : > { %s873_s12 = smov (!%p240_p4, %s756_s12), 7  ;;  %vm282_vm0 = vcmask 64512   ;;  %vm277_vm1 = vcmask 7168   ;;  %v766_v3 = vmov -inf   ;;  %v767_v8 = vmov 0  }
   0xd   : > { %s672_s16 = sshll.u32 %s873_s12, 3  ;;  %s683_s17 = sshll.u32 %s873_s12, 4  ;;  %278 = vst.msk [vmem:[#allocation2] sm:$0xff] %vm277_vm1, %v766_v3  ;;  %279 = vst.msk [vmem:[#allocation2 + $0x8] sm:$0xff] %vm277_vm1, %v766_v3  ;;  %728 = vset.pattern.permute.xlu1 %v767_v8  ;;  %729 = vset.pattern.permute.xlu0 %v767_v8  ;;  %v768_v9 = vmov 0.0  }
   0xe   : > { %s255_s20 = scalar_lea.vmem %s865_s1, %s672_s16  ;;  %s247_s23 = scalar_lea.vmem %s864_s0, %s683_s17  ;;  %280 = vst.msk [vmem:[#allocation3] sm:$0xff] %vm277_vm1, %v768_v9  ;;  %281 = vst.msk [vmem:[#allocation3 + $0x8] sm:$0xff] %vm277_vm1, %v768_v9 }
   0xf   : > { %v287_v0 = vld [vmem:[%s255_s20] sm:$0xff]  ;;  %v286_v2 = vld [vmem:[%s247_s23 + $0x8] sm:$0xff]  ;;  %283 = vst.msk [vmem:[#allocation4] sm:$0xff] %vm282_vm0, %v768_v9  ;;  %284 = vst.msk [vmem:[#allocation4 + $0x8] sm:$0xff] %vm282_vm0, %v768_v9  ;;  %s262_s26 = scalar_lea.vmem %s866_s2, %s672_s16  ;;  %s271_s29 = scalar_lea.vmem %s867_s3, %s683_s17 }
  0x10   : > { %v285_v1 = vld [vmem:[%s247_s23] sm:$0xff]  ;;  %691 = vmatprep.subr.msk.mxu0 %vm282_vm0, %v287_v0 }
  0x11   : > { %693 = vmatprep.mubr.msk.f32.mxu0 %vm282_vm0, %v285_v1  ;;  %692 = vmatpush3.xpose.msk.msra.mxu0 %vm282_vm0, %v287_v0  ;;  %v434_v18 = vld [vmem:[%s262_s26] sm:$0xff] }
  0x12   : > { %696 = vmatprep.subr.mxu1 %v434_v18 }
  0x13   : > { %697 = vmatpush3.msra.mxu1 %v434_v18 }
  0x14   : > { %694 = vmatmul.mubr.msk.f32.vlgmr.msra.gmra.mxu0 %vm282_vm0, %v286_v2  ;;  %v373_v10 = vld [vmem:[#allocation2] sm:$0xff]  ;;  %v374_v13 = vld [vmem:[#allocation2 + $0x8] sm:$0xff] }
  0x15   : > { %v405_v32 = vld [vmem:[#allocation3] sm:$0xff]  ;;  %v406_v36 = vld [vmem:[#allocation3 + $0x8] sm:$0xff] }
  0x16   : > { %v420_v43 = vld [vmem:[#allocation4] sm:$0xff]  ;;  %v421_v50 = vld [vmem:[#allocation4 + $0x8] sm:$0xff] }
  0xd4   : > { %v695_v4 = vpop.f32.mrf.mxu0 }
  0xd5   : > { %v378_v7 = vsel %vm282_vm0, %v695_v4, -inf }
  0xd6   : > { %v364_v5 = vpop.f32.mrf.mxu0 }
  0xd7   : > { %v375_v6 = vsel %vm282_vm0, %v364_v5, -inf }
  0xd8   : > { %376 = vmax.xlane.f32.xlu0 %v375_v6 }
  0xdc   : > { %379 = vmax.xlane.f32.xlu0 %v378_v7 }
 0x161   : > { %v377_v11 = vpop.xlane.xlu0 %376 }
 0x162   : > { %v381_v12 = vmax.f32 %v373_v10, %v377_v11 }
 0x164   : > { %v383_v14 = vsub.f32 %v373_v10, %v381_v12  ;;  %520 = vst.msk [vmem:[#allocation2] sm:$0xff] %vm277_vm1, %v381_v12  ;;  %391 = vperm.xlu1 %728, %v381_v12  }
 0x165   : > { %v380_v15 = vpop.xlane.xlu0 %379 }
 0x166   : > { %v382_v16 = vmax.f32 %v374_v13, %v380_v15  ;;  %v385_v29 = vmul.f32 1.442695, %v383_v14 }
 0x168   : > { %v384_v17 = vsub.f32 %v374_v13, %v382_v16  ;;  %521 = vst.msk [vmem:[#allocation2 + $0x8] sm:$0xff] %vm277_vm1, %v382_v16  ;;  %396 = vperm.xlu1 %728, %v382_v16  }
 0x16a   : > { %v387_v31 = vmul.f32 1.442695, %v384_v17 }
 0x1df   : > { %v392_v19 = vpop.permute.xlu1 %391 }
 0x1e0   : > { %v399_v20 = vsub.f32 %v364_v5, %v392_v19 }
 0x1e2   : > { %v401_v21 = vmul.f32 1.442695, %v399_v20 }
 0x1e3   : > { %v397_v22 = vpop.permute.xlu1 %396 }
 0x1e4   : > { %730 = vpow2.f32 %v401_v21  ;;  %v400_v23 = vsub.f32 %v695_v4, %v397_v22 }
 0x1e6   : > { %v403_v24 = vmul.f32 1.442695, %v400_v23 }
 0x1e8   : > { %732 = vpow2.f32 %v403_v24 }
 0x1e9   : > { %734 = vpow2.f32 %v385_v29 }
 0x1ea   : > { %736 = vpow2.f32 %v387_v31 }
 0x1f1   : > { %v731_v25 = vpop.eup %730 }
 0x1f2   : > { %698 = vmatprep.mubr.msk.f32.mxu1 %vm282_vm0, %v731_v25  ;;  %v409_v26 = vsel %vm282_vm0, %v731_v25, 0.0 }
 0x1f3   : > { %410 = vadd.xlane.f32.xlu0 %v409_v26 }
 0x1f5   : > { %v733_v27 = vpop.eup %732 }
 0x1f6   : > { %699 = vmatmul.mubr.msk.f32.vlgmr.msra.gmra.mxu1 %vm282_vm0, %v733_v27  ;;  %v412_v28 = vsel %vm282_vm0, %v733_v27, 0.0  ;;  %v735_v30 = vpop.eup %734 }
 0x1f7   : > { %413 = vadd.xlane.f32.xlu1 %v412_v28  ;;  %v407_v33 = vmul.f32 %v735_v30, %v405_v32  ;;  %v737_v34 = vpop.eup %736 }
 0x1f8   : > { %v408_v38 = vmul.f32 %v737_v34, %v406_v36 }
 0x209   : > { %424 = vperm.xlu0 %729, %v735_v30  }
 0x27c   : > { %v411_v35 = vpop.xlane.xlu0 %410 }
 0x27d   : > { %v415_v37 = vadd.f32 %v411_v35, %v407_v33 }
 0x27f   : > { %418 = vst.msk [vmem:[#allocation3] sm:$0xff] %vm277_vm1, %v415_v37 }
 0x280   : > { %v414_v39 = vpop.xlane.xlu1 %413 }
 0x281   : > { %v416_v40 = vadd.f32 %v414_v39, %v408_v38 }
 0x283   : > { %419 = vst.msk [vmem:[#allocation3 + $0x8] sm:$0xff] %vm277_vm1, %v416_v40 }
 0x284   : > { %v425_v44 = vpop.permute.xlu0 %424 }
 0x285   : > { %v432_v46 = vmul.f32 %v425_v44, %v420_v43 }
 0x286   : > { %v527_v41 = vld [vmem:[#allocation3] sm:$0xff] }
 0x287   : > { %531 = vperm.xlu0 %729, %v527_v41  }
 0x28a   : > { %v528_v42 = vld [vmem:[#allocation3 + $0x8] sm:$0xff] }
 0x28b   : > { %536 = vperm.xlu1 %728, %v528_v42   ;;  %429 = vperm.xlu0 %729, %v737_v34  }
 0x2b6   : > { %v700_v45 = vpop.f32.mrf.mxu1 }
 0x2b8   : > { %v507_v47 = vpop.f32.mrf.mxu1 }
 0x2b9   : > { %v516_v48 = vadd.f32 %v507_v47, %v432_v46 }
 0x2bb   : > { %518 = vst.msk [vmem:[#allocation4] sm:$0xff] %vm282_vm0, %v516_v48 }
 0x2c2   : > { %v525_v56 = vld [vmem:[#allocation4] sm:$0xff] }
 0x302   : > { %v532_v49 = vpop.permute.xlu0 %531 }
 0x303   : > { %738 = vrcp.f32 %v532_v49 }
 0x306   : > { %v537_v51 = vpop.permute.xlu1 %536  ;;  %v430_v52 = vpop.permute.xlu0 %429 }
 0x307   : > { %740 = vrcp.f32 %v537_v51  ;;  %v433_v53 = vmul.f32 %v430_v52, %v421_v50 }
 0x309   : > { %v517_v54 = vadd.f32 %v700_v45, %v433_v53 }
 0x30b   : > { %519 = vst.msk [vmem:[#allocation4 + $0x8] sm:$0xff] %vm282_vm0, %v517_v54 }
 0x310   : > { %v739_v55 = vpop.eup %738 }
 0x311   : > { %v540_v57 = vmul.f32 %v739_v55, %v525_v56 }
 0x312   : > { %v526_v59 = vld [vmem:[#allocation4 + $0x8] sm:$0xff] }
 0x313   : > { %543 = vst.msk [vmem:[%s271_s29] sm:$0xff] %vm282_vm0, %v540_v57 }
 0x314   : > { %v741_v58 = vpop.eup %740 }
 0x315   : > { %v542_v60 = vmul.f32 %v741_v58, %v526_v59 }
 0x317   : > { %544 = vst.msk [vmem:[%s271_s29 + $0x8] sm:$0xff] %vm282_vm0, %v542_v60 }
 0x318 PF: > { %s13_s14 = sadd.s32 1, %s764_s14   ;;  %s868_s12 = smov %s760_s13 }
 0x319   : > { %p10_p5 = scmp.ge.s32.totalorder %s13_s14, 10   ;;  %s869_s13 = smov %s871_s15 }
 0x31b   :  { %12 = sbr.rel (!%p10_p5) target bundleno = 2 (0x2), region = 76 }

// kernel: basic_transformer_block.17
= control target key start
LH: loop header
LB: loop body
LE: loop exit
PB: predicated region body
PF: predicated region fallthrough
CT: control target
= control target key end

     0   :  { %vm22_vm0 = vcmask 261120   ;;  %v308_v2 = vmov 0.0   ;;  %s427_s0 = inlined_call_operand.vmem [shape: f32[32,128], index: 0, kind: input, shape index: {}]   ;;  %s428_s1 = inlined_call_operand.vmem [shape: f32[128,32], index: 1, kind: input, shape index: {}]   ;;  %s429_s2 = inlined_call_operand.vmem [shape: f32[1,32], index: 2, kind: input, shape index: {}]   ;;  %s430_s3 = inlined_call_operand.vmem [shape: f32[32,32], index: 3, kind: input, shape index: {}]   ;;  %s431_s4 = inlined_call_operand.hbm [shape: f32[32,32], index: 4, kind: output, shape index: {}]  }
   0x1   :  { %v50_v0 = vld [vmem:[%s428_s1 + $0x78] sm:$0xff]  ;;  %v49_v1 = vld [vmem:[%s428_s1 + $0x70] sm:$0xff]  ;;  %24 = vst.msk [vmem:[#allocation2 + $0x8] sm:$0xff] %vm22_vm0, %v308_v2  ;;  %23 = vst.msk [vmem:[#allocation2] sm:$0xff] %vm22_vm0, %v308_v2 }
   0x2   :  { %212 = vmatprep.subr.mxu0 %v50_v0  ;;  %250 = vmatprep.subr.mxu1 %v50_v0  ;;  %25 = vst.msk [vmem:[#allocation2 + $0x10] sm:$0xff] %vm22_vm0, %v308_v2  ;;  %26 = vst.msk [vmem:[#allocation2 + $0x18] sm:$0xff] %vm22_vm0, %v308_v2  ;;  %v48_v3 = vld [vmem:[%s428_s1 + $0x68] sm:$0xff]  ;;  %v47_v4 = vld [vmem:[%s428_s1 + $0x60] sm:$0xff] }
   0x3   :  { %213 = vmatpush3.msra.mxu0 %v50_v0  ;;  %266 = vmatpush3.msra.mxu1 %v50_v0  ;;  %v46_v5 = vld [vmem:[%s428_s1 + $0x58] sm:$0xff] }
   0x4   :  { %214 = vmatprep.subr.mxu0 %v49_v1  ;;  %251 = vmatprep.subr.mxu1 %v49_v1 }
   0x5   :  { %215 = vmatpush3.msra.mxu0 %v49_v1  ;;  %267 = vmatpush3.msra.mxu1 %v49_v1 }
   0x6   :  { %216 = vmatprep.subr.mxu0 %v48_v3  ;;  %252 = vmatprep.subr.mxu1 %v48_v3 }
   0x7   :  { %217 = vmatpush3.msra.mxu0 %v48_v3  ;;  %268 = vmatpush3.msra.mxu1 %v48_v3 }
   0x8   :  { %9 = vsyncpa [#allocation4], 0  ;;  %218 = vmatprep.subr.mxu0 %v47_v4  ;;  %253 = vmatprep.subr.mxu1 %v47_v4  ;;  %v45_v6 = vld [vmem:[%s428_s1 + $0x50] sm:$0xff]  ;;  %v44_v7 = vld [vmem:[%s428_s1 + $0x48] sm:$0xff]  ;;  %s309_s9 = smov [#allocation3]  }
   0x9   :  { %219 = vmatpush3.msra.mxu0 %v47_v4  ;;  %269 = vmatpush3.msra.mxu1 %v47_v4  ;;  %v43_v8 = vld [vmem:[%s428_s1 + $0x40] sm:$0xff]  ;;  %v42_v9 = vld [vmem:[%s428_s1 + $0x38] sm:$0xff]  ;;  %v41_v10 = vld [vmem:[%s428_s1 + $0x30] sm:$0xff]  ;;  %s180_s10 = sshll.u32 %s309_s9, 4  ;;  %s181_s10 = int_to_ptr.vmem [resolvable:$true] %s180_s10 }
   0xa   :  { %220 = vmatprep.subr.mxu0 %v46_v5  ;;  %254 = vmatprep.subr.mxu1 %v46_v5  ;;  %v40_v11 = vld [vmem:[%s428_s1 + $0x28] sm:$0xff]  ;;  %v39_v12 = vld [vmem:[%s428_s1 + $0x20] sm:$0xff]  ;;  %v38_v13 = vld [vmem:[%s428_s1 + $0x18] sm:$0xff]  ;;  %s286_s12 = scalar_lea.vmem %s181_s10, 512  ;;  %p291_p1 = scmp.lt.s32.totalorder %s181_s10, %s181_s10 }
   0xb   :  { %221 = vmatpush3.msra.mxu0 %v46_v5  ;;  %270 = vmatpush3.msra.mxu1 %v46_v5  ;;  %v37_v14 = vld [vmem:[%s428_s1 + $0x10] sm:$0xff]  ;;  %v36_v15 = vld [vmem:[%s428_s1 + $0x8] sm:$0xff]  ;;  %v35_v16 = vld [vmem:[%s428_s1] sm:$0xff]  ;;  %p287_p0 = scmp.ne.s32.totalorder %s181_s10, %s286_s12  ;;  %p292_p2 = scmp.lt.s32.totalorder %s286_s12, %s286_s12 }
   0xc   :  { %222 = vmatprep.subr.mxu0 %v45_v6  ;;  %255 = vmatprep.subr.mxu1 %v45_v6  ;;  %v31_v17 = vld [vmem:[%s427_s0] sm:$0xff]  ;;  %v33_v18 = vld [vmem:[%s427_s0 + $0x10] sm:$0xff]  ;;  %v32_v19 = vld [vmem:[%s427_s0 + $0x8] sm:$0xff] }
   0xd   :  { %223 = vmatpush3.msra.mxu0 %v45_v6  ;;  %271 = vmatpush3.msra.mxu1 %v45_v6  ;;  %v34_v20 = vld [vmem:[%s427_s0 + $0x18] sm:$0xff]  ;;  %v28_v21 = vld [vmem:[#allocation2 + $0x8] sm:$0xff]  ;;  %v27_v25 = vld [vmem:[#allocation2] sm:$0xff]  ;;  %p293_p3 = por %p292_p2, %p291_p1 }
   0xe   :  { %224 = vmatprep.subr.mxu0 %v44_v7  ;;  %256 = vmatprep.subr.mxu1 %v44_v7  ;;  %v30_v22 = vld [vmem:[#allocation2 + $0x18] sm:$0xff]  ;;  %v29_v26 = vld [vmem:[#allocation2 + $0x10] sm:$0xff]  ;;  %v191_v33 = vld [vmem:[%s429_s2] ss:$0 sm:$0xff] }
   0xf   :  { %225 = vmatpush3.msra.mxu0 %v44_v7  ;;  %272 = vmatpush3.msra.mxu1 %v44_v7  ;;  %v164_v34 = vld [vmem:[%s430_s3 + $0x8] sm:$0xff]  ;;  %v166_v37 = vld [vmem:[%s430_s3 + $0x18] sm:$0xff]  ;;  %v163_v40 = vld [vmem:[%s430_s3] sm:$0xff]  ;;  %p294_p4 = pnand %p293_p3, %p287_p0 }
  0x10   :  { %226 = vmatprep.subr.mxu0 %v43_v8  ;;  %257 = vmatprep.subr.mxu1 %v43_v8  ;;  %v165_v43 = vld [vmem:[%s430_s3 + $0x10] sm:$0xff] }
  0x11   :  { %227 = vmatpush3.msra.mxu0 %v43_v8  ;;  %273 = vmatpush3.msra.mxu1 %v43_v8 }
  0x12   :  { %228 = vmatprep.subr.mxu0 %v42_v9  ;;  %258 = vmatprep.subr.mxu1 %v42_v9 }
  0x13   :  { %229 = vmatpush3.msra.mxu0 %v42_v9  ;;  %274 = vmatpush3.msra.mxu1 %v42_v9 }
  0x14   :  { %230 = vmatprep.subr.mxu0 %v41_v10  ;;  %259 = vmatprep.subr.mxu1 %v41_v10 }
  0x15   :  { %231 = vmatpush3.msra.mxu0 %v41_v10  ;;  %275 = vmatpush3.msra.mxu1 %v41_v10 }
  0x16   :  { %232 = vmatprep.subr.mxu0 %v40_v11  ;;  %260 = vmatprep.subr.mxu1 %v40_v11 }
  0x17   :  { %233 = vmatpush3.msra.mxu0 %v40_v11  ;;  %276 = vmatpush3.msra.mxu1 %v40_v11 }
  0x18   :  { %234 = vmatprep.subr.mxu0 %v39_v12  ;;  %261 = vmatprep.subr.mxu1 %v39_v12 }
  0x19   :  { %235 = vmatpush3.msra.mxu0 %v39_v12  ;;  %277 = vmatpush3.msra.mxu1 %v39_v12 }
  0x1a   :  { %236 = vmatprep.subr.mxu0 %v38_v13  ;;  %262 = vmatprep.subr.mxu1 %v38_v13 }
  0x1b   :  { %237 = vmatpush3.msra.mxu0 %v38_v13  ;;  %278 = vmatpush3.msra.mxu1 %v38_v13 }
  0x1c   :  { %238 = vmatprep.subr.mxu0 %v37_v14  ;;  %263 = vmatprep.subr.mxu1 %v37_v14 }
  0x1d   :  { %239 = vmatpush3.msra.mxu0 %v37_v14  ;;  %279 = vmatpush3.msra.mxu1 %v37_v14 }
  0x1e   :  { %240 = vmatprep.subr.mxu0 %v36_v15  ;;  %264 = vmatprep.subr.mxu1 %v36_v15 }
  0x1f   :  { %241 = vmatpush3.msra.mxu0 %v36_v15  ;;  %280 = vmatpush3.msra.mxu1 %v36_v15 }
  0x20   :  { %242 = vmatprep.subr.mxu0 %v35_v16  ;;  %265 = vmatprep.subr.mxu1 %v35_v16 }
  0x21   :  { %243 = vmatpush3.msra.mxu0 %v35_v16  ;;  %281 = vmatpush3.msra.mxu1 %v35_v16 }
  0x22   :  { %244 = vmatprep.mubr.f32.mxu0 %v31_v17  ;;  %247 = vmatprep.mubr.f32.mxu1 %v33_v18 }
  0x23   :  { %245 = vmatmul.mubr.f32.vlgmr.msra.gmra.mxu0 %v32_v19  ;;  %248 = vmatmul.mubr.f32.vlgmr.msra.gmra.mxu1 %v34_v20 }
  0xe3   :  { %v246_v23 = vpop.f32.mrf.mxu0  ;;  %v249_v24 = vpop.f32.mrf.mxu1 }
  0xe4   :  { %v137_v27 = vadd.f32 %v246_v23, %v28_v21  ;;  %v139_v28 = vadd.f32 %v249_v24, %v30_v22 }
  0xe5   :  { %v117_v29 = vpop.f32.mrf.mxu0  ;;  %v127_v30 = vpop.f32.mrf.mxu1 }
  0xe6   :  { %142 = vst.msk [vmem:[#allocation2 + $0x8] sm:$0xff] %vm22_vm0, %v137_v27  ;;  %144 = vst.msk [vmem:[#allocation2 + $0x18] sm:$0xff] %vm22_vm0, %v139_v28  ;;  %v136_v31 = vadd.f32 %v117_v29, %v27_v25  ;;  %v138_v32 = vadd.f32 %v127_v30, %v29_v26 }
  0xe8   :  { %141 = vst.msk [vmem:[#allocation2] sm:$0xff] %vm22_vm0, %v136_v31  ;;  %143 = vst.msk [vmem:[#allocation2 + $0x10] sm:$0xff] %vm22_vm0, %v138_v32 }
  0xed   :  { %v149_v35 = vld [vmem:[#allocation2 + $0x8] sm:$0xff]  ;;  %v151_v36 = vld [vmem:[#allocation2 + $0x18] sm:$0xff] }
  0xee   :  { %v160_v38 = vadd.f32 %v191_v33, %v149_v35  ;;  %v162_v39 = vadd.f32 %v191_v33, %v151_v36 }
  0xef   :  { %v148_v41 = vld [vmem:[#allocation2] sm:$0xff]  ;;  %v150_v42 = vld [vmem:[#allocation2 + $0x10] sm:$0xff] }
  0xf0   :  { %v159_v44 = vadd.f32 %v191_v33, %v148_v41  ;;  %v161_v45 = vadd.f32 %v191_v33, %v150_v42  ;;  %v168_v46 = vadd.f32 %v164_v34, %v160_v38  ;;  %v170_v47 = vadd.f32 %v166_v37, %v162_v39 }
  0xf2   :  { %v167_v48 = vadd.f32 %v163_v40, %v159_v44  ;;  %v169_v49 = vadd.f32 %v165_v43, %v161_v45  ;;  %172 = vst.msk [vmem:[#allocation3 + $0x8] sm:$0xff] %vm22_vm0, %v168_v46  ;;  %174 = vst.msk [vmem:[#allocation3 + $0x18] sm:$0xff] %vm22_vm0, %v170_v47 }
  0xf4   :  { %171 = vst.msk [vmem:[#allocation3] sm:$0xff] %vm22_vm0, %v167_v48  ;;  %173 = vst.msk [vmem:[#allocation3 + $0x10] sm:$0xff] %vm22_vm0, %v169_v49 }
  0xf5   :  { %297 = shalt.err (!%p294_p4)
}
  0xf6   :  { %s310_s3 = smov 128   ;;  %s311_s13 = smov 8  }
  0xf7   :  { %186 = dma.vmem_to_hbm [thread:$0]  %s181_s10, 512, %s431_s4, [#allocation4], %s310_s3, %s310_s3, %s311_s13  }
  0xf8   :  { %306 = dma.done.wait [#allocation4], 512  }
  0xf9   :  { %307 = vsyncadd [#allocation4], 4294966784 }
  0xfa   :  { %190 = vsyncpa [#allocation4], 1 }

// kernel: basic_transformer_block.16
= control target key start
LH: loop header
LB: loop body
LE: loop exit
PB: predicated region body
PF: predicated region fallthrough
CT: control target
= control target key end

     0   :  { %vm36_vm0 = vcmask 261120   ;;  %s567_s0 = inlined_call_operand.vmem [shape: f32[32,32], index: 0, kind: input, shape index: {}]   ;;  %s568_s3 = inlined_call_operand.vmem [shape: f32[32,128], index: 3, kind: input, shape index: {}]   ;;  %s569_s4 = inlined_call_operand.vmem [shape: f32[32,128], index: 4, kind: input, shape index: {}]   ;;  %s570_s1 = inlined_call_operand.vmem [shape: f32[1,32], index: 1, kind: input, shape index: {}]   ;;  %s571_s2 = inlined_call_operand.vmem [shape: f32[1,32], index: 2, kind: input, shape index: {}]   ;;  %s572_s6 = inlined_call_operand.vmem [shape: f32[1,128], index: 6, kind: input, shape index: {}]   ;;  %s573_s5 = inlined_call_operand.vmem [shape: f32[1,128], index: 5, kind: input, shape index: {}]   ;;  %s574_s7 = inlined_call_operand.vmem [shape: f32[32,128], index: 7, kind: output, shape index: {}]  }
   0x1   :  { %v30_v0 = vld [vmem:[%s567_s0] sm:$0xff]  ;;  %v32_v1 = vld [vmem:[%s567_s0 + $0x10] sm:$0xff]  ;;  %v31_v2 = vld [vmem:[%s567_s0 + $0x8] sm:$0xff] }
   0x2   :  { %v37_v3 = vsel %vm36_vm0, %v30_v0, 0.0  ;;  %v43_v4 = vsel %vm36_vm0, %v32_v1, 0.0  ;;  %v33_v5 = vld [vmem:[%s567_s0 + $0x18] sm:$0xff]  ;;  %v40_v6 = vsel %vm36_vm0, %v31_v2, 0.0  ;;  %v120_v30 = vld [vmem:[%s568_s3 + $0x10] sm:$0xff]  ;;  %v119_v32 = vld [vmem:[%s568_s3 + $0x8] sm:$0xff] }
   0x3   :  { %38 = vadd.xlane.f32.xlu0 %v37_v3  ;;  %44 = vadd.xlane.f32.xlu1 %v43_v4  ;;  %v46_v7 = vsel %vm36_vm0, %v33_v5, 0.0  ;;  %v121_v28 = vld [vmem:[%s568_s3 + $0x18] sm:$0xff]  ;;  %v229_v31 = vld [vmem:[%s569_s4 + $0x10] sm:$0xff]  ;;  %v228_v33 = vld [vmem:[%s569_s4 + $0x8] sm:$0xff] }
   0x4   :  { %v230_v29 = vld [vmem:[%s569_s4 + $0x18] sm:$0xff]  ;;  %383 = vmatprep.subr.mxu0 %v121_v28  ;;  %v118_v34 = vld [vmem:[%s568_s3] sm:$0xff] }
   0x5   :  { %397 = vmatprep.subr.mxu1 %v230_v29  ;;  %384 = vmatpush3.msra.mxu0 %v121_v28  ;;  %v227_v35 = vld [vmem:[%s569_s4] sm:$0xff] }
   0x6   :  { %398 = vmatpush3.msra.mxu1 %v230_v29  ;;  %385 = vmatprep.subr.mxu0 %v120_v30  ;;  %v355_v49 = vld [vmem:[%s570_s1] ss:$0 sm:$0xff] }
   0x7   :  { %41 = vadd.xlane.f32.xlu0 %v40_v6  ;;  %47 = vadd.xlane.f32.xlu1 %v46_v7  ;;  %v356_v51 = vld [vmem:[%s571_s2] ss:$0 sm:$0xff] }
   0x8   :  { %399 = vmatprep.subr.mxu1 %v229_v31  ;;  %386 = vmatpush3.msra.mxu0 %v120_v30  ;;  %v362_v6 = vld [vmem:[%s572_s6] ss:$0 sm:$0xff] }
   0x9   :  { %400 = vmatpush3.msra.mxu1 %v229_v31  ;;  %387 = vmatprep.subr.mxu0 %v119_v32 }
   0xa   :  { %401 = vmatprep.subr.mxu1 %v228_v33  ;;  %388 = vmatpush3.msra.mxu0 %v119_v32 }
   0xb   :  { %402 = vmatpush3.msra.mxu1 %v228_v33  ;;  %389 = vmatprep.subr.mxu0 %v118_v34 }
   0xc   :  { %403 = vmatprep.subr.mxu1 %v227_v35  ;;  %390 = vmatpush3.msra.mxu0 %v118_v34 }
   0xd   :  { %404 = vmatpush3.msra.mxu1 %v227_v35 }
  0x8c   :  { %v39_v8 = vpop.xlane.xlu0 %38  ;;  %v45_v9 = vpop.xlane.xlu1 %44 }
  0x8d   :  { %v50_v10 = vmul.f32 0.03125, %v39_v8  ;;  %v52_v11 = vmul.f32 0.03125, %v45_v9 }
  0x8f   :  { %v483_v12 = vsub.f32 %v30_v0, %v50_v10  ;;  %v485_v13 = vsub.f32 %v32_v1, %v52_v11 }
  0x90   :  { %v42_v14 = vpop.xlane.xlu0 %41  ;;  %v48_v15 = vpop.xlane.xlu1 %47 }
  0x91   :  { %v51_v16 = vmul.f32 0.03125, %v42_v14  ;;  %v53_v17 = vmul.f32 0.03125, %v48_v15  ;;  %v58_v18 = vmul.f32 %v483_v12, %v483_v12  ;;  %v60_v19 = vmul.f32 %v485_v13, %v485_v13 }
  0x93   :  { %v491_v20 = vsub.f32 %v31_v2, %v51_v16  ;;  %v493_v21 = vsub.f32 %v33_v5, %v53_v17  ;;  %v62_v22 = vsel %vm36_vm0, %v58_v18, 0.0  ;;  %v68_v23 = vsel %vm36_vm0, %v60_v19, 0.0 }
  0x94   :  { %63 = vadd.xlane.f32.xlu0 %v62_v22  ;;  %v357_v22 = vld [vmem:[%s573_s5] ss:$0 sm:$0xff] }
  0x95   :  { %v59_v24 = vmul.f32 %v491_v20, %v491_v20  ;;  %v61_v25 = vmul.f32 %v493_v21, %v493_v21 }
  0x97   :  { %v65_v26 = vsel %vm36_vm0, %v59_v24, 0.0  ;;  %v71_v27 = vsel %vm36_vm0, %v61_v25, 0.0 }
  0x98   :  { %69 = vadd.xlane.f32.xlu0 %v68_v23  ;;  %66 = vadd.xlane.f32.xlu1 %v65_v26 }
  0x9c   :  { %72 = vadd.xlane.f32.xlu1 %v71_v27 }
 0x11d   :  { %v64_v36 = vpop.xlane.xlu0 %63 }
 0x11e   :  { %v74_v37 = vmul.f32 0.03125, %v64_v36 }
 0x120   :  { %v78_v38 = vadd.f32 1e-05, %v74_v37 }
 0x121   :  { %v67_v39 = vpop.xlane.xlu1 %66  ;;  %v70_v40 = vpop.xlane.xlu0 %69 }
 0x122   :  { %411 = vrsqrt.f32 %v78_v38  ;;  %v75_v41 = vmul.f32 0.03125, %v67_v39  ;;  %v76_v42 = vmul.f32 0.03125, %v70_v40 }
 0x124   :  { %v79_v43 = vadd.f32 1e-05, %v75_v41  ;;  %v80_v44 = vadd.f32 1e-05, %v76_v42 }
 0x125   :  { %v73_v45 = vpop.xlane.xlu1 %72 }
 0x126   :  { %413 = vrsqrt.f32 %v79_v43  ;;  %v77_v46 = vmul.f32 0.03125, %v73_v45 }
 0x127   :  { %415 = vrsqrt.f32 %v80_v44 }
 0x128   :  { %v81_v47 = vadd.f32 1e-05, %v77_v46 }
 0x12a   :  { %417 = vrsqrt.f32 %v81_v47 }
 0x12f   :  { %v412_v48 = vpop.eup %411 }
 0x130   :  { %v86_v50 = vmul.f32 %v412_v48, %v483_v12 }
 0x132   :  { %v96_v52 = vmul.f32 %v355_v49, %v86_v50 }
 0x133   :  { %v414_v53 = vpop.eup %413 }
 0x134   :  { %v416_v54 = vpop.eup %415  ;;  %v106_v55 = vadd.f32 %v356_v51, %v96_v52  ;;  %v87_v56 = vmul.f32 %v414_v53, %v491_v20 }
 0x135   :  { %v88_v57 = vmul.f32 %v416_v54, %v485_v13 }
 0x136   :  { %110 = vst.msk [vmem:[#allocation2] sm:$0xff] %vm36_vm0, %v106_v55  ;;  %v97_v58 = vmul.f32 %v355_v49, %v87_v56 }
 0x137   :  { %v418_v59 = vpop.eup %417  ;;  %v98_v60 = vmul.f32 %v355_v49, %v88_v57 }
 0x138   :  { %v107_v61 = vadd.f32 %v356_v51, %v97_v58  ;;  %v89_v62 = vmul.f32 %v418_v59, %v493_v21 }
 0x139   :  { %v108_v63 = vadd.f32 %v356_v51, %v98_v60 }
 0x13a   :  { %111 = vst.msk [vmem:[#allocation2 + $0x8] sm:$0xff] %vm36_vm0, %v107_v61  ;;  %v99_v0 = vmul.f32 %v355_v49, %v89_v62 }
 0x13b   :  { %112 = vst.msk [vmem:[#allocation2 + $0x10] sm:$0xff] %vm36_vm0, %v108_v63 }
 0x13c   :  { %v109_v1 = vadd.f32 %v356_v51, %v99_v0 }
 0x13d   :  { %v114_v2 = vld [vmem:[#allocation2] sm:$0xff] }
 0x13e   :  { %113 = vst.msk [vmem:[#allocation2 + $0x18] sm:$0xff] %vm36_vm0, %v109_v1  ;;  %391 = vmatprep.mubr.msk.f32.mxu0 %vm36_vm0, %v114_v2  ;;  %405 = vmatprep.mubr.msk.f32.mxu1 %vm36_vm0, %v114_v2 }
 0x141   :  { %v115_v3 = vld [vmem:[#allocation2 + $0x8] sm:$0xff] }
 0x142   :  { %392 = vmatmul.mubr.msk.f32.vlgmr.msra.gmra.mxu0 %vm36_vm0, %v115_v3  ;;  %406 = vmatmul.mubr.msk.f32.vlgmr.msra.gmra.mxu1 %vm36_vm0, %v115_v3  ;;  %v116_v4 = vld [vmem:[#allocation2 + $0x10] sm:$0xff] }
 0x143   :  { %394 = vmatprep.mubr.msk.f32.mxu0 %vm36_vm0, %v116_v4  ;;  %408 = vmatprep.mubr.msk.f32.mxu1 %vm36_vm0, %v116_v4 }
 0x145   :  { %v117_v5 = vld [vmem:[#allocation2 + $0x18] sm:$0xff] }
 0x146   :  { %395 = vmatmul.mubr.msk.f32.gmra.mxu0 %vm36_vm0, %v117_v5  ;;  %409 = vmatmul.mubr.msk.f32.gmra.mxu1 %vm36_vm0, %v117_v5 }
 0x202   :  { %v407_v7 = vpop.f32.mrf.mxu1  ;;  %v393_v19 = vpop.f32.mrf.mxu0 }
 0x203   :  { %v310_v8 = vadd.f32 %v407_v7, %v362_v6  ;;  %v214_v27 = vadd.f32 %v393_v19, %v357_v22 }
 0x204   :  { %v304_v9 = vpop.f32.mrf.mxu1  ;;  %v208_v20 = vpop.f32.mrf.mxu0 }
 0x205   :  { %v328_v10 = vmul.f32 0.70710677, %v310_v8  ;;  %v305_v11 = vadd.f32 %v362_v6, %v304_v9  ;;  %v324_v23 = vmul.f32 0.5, %v310_v8  ;;  %v209_v33 = vadd.f32 %v357_v22, %v208_v20 }
 0x206   :  { %v410_v12 = vpop.f32.mrf.mxu1  ;;  %v396_v26 = vpop.f32.mrf.mxu0 }
 0x207   :  { %419 = verf.f32 %v328_v10  ;;  %v327_v13 = vmul.f32 0.70710677, %v305_v11  ;;  %v320_v14 = vadd.f32 %v410_v12, %v362_v6  ;;  %v323_v29 = vmul.f32 0.5, %v305_v11 }
 0x208   :  { %v314_v15 = vpop.f32.mrf.mxu1  ;;  %v218_v38 = vpop.f32.mrf.mxu0  ;;  %v224_v42 = vadd.f32 %v396_v26, %v357_v22 }
 0x209   :  { %421 = verf.f32 %v327_v13  ;;  %v315_v16 = vadd.f32 %v362_v6, %v314_v15  ;;  %v330_v17 = vmul.f32 0.70710677, %v320_v14  ;;  %v326_v36 = vmul.f32 0.5, %v320_v14 }
 0x20a   :  { %v219_v44 = vadd.f32 %v357_v22, %v218_v38 }
 0x20b   :  { %v329_v18 = vmul.f32 0.70710677, %v315_v16  ;;  %423 = verf.f32 %v330_v17  ;;  %v325_v40 = vmul.f32 0.5, %v315_v16 }
 0x20d   :  { %425 = verf.f32 %v329_v18 }
 0x214   :  { %v420_v21 = vpop.eup %419 }
 0x215   :  { %v336_v24 = vadd.f32 1.0, %v420_v21 }
 0x216   :  { %v422_v25 = vpop.eup %421 }
 0x217   :  { %v340_v28 = vmul.f32 %v336_v24, %v324_v23  ;;  %v335_v30 = vadd.f32 1.0, %v422_v25 }
 0x218   :  { %v424_v31 = vpop.eup %423 }
 0x219   :  { %v344_v32 = vmul.f32 %v340_v28, %v214_v27  ;;  %v339_v34 = vmul.f32 %v335_v30, %v323_v29  ;;  %v338_v37 = vadd.f32 1.0, %v424_v31 }
 0x21a   :  { %v426_v35 = vpop.eup %425 }
 0x21b   :  { %348 = vst [vmem:[%s574_s7 + $0x8] sm:$0xff] %v344_v32  ;;  %v343_v39 = vmul.f32 %v339_v34, %v209_v33  ;;  %v337_v41 = vadd.f32 1.0, %v426_v35  ;;  %v342_v43 = vmul.f32 %v338_v37, %v326_v36 }
 0x21d   :  { %347 = vst [vmem:[%s574_s7] sm:$0xff] %v343_v39  ;;  %v341_v45 = vmul.f32 %v337_v41, %v325_v40  ;;  %v346_v46 = vmul.f32 %v342_v43, %v224_v42 }
 0x21f   :  { %v345_v47 = vmul.f32 %v341_v45, %v219_v44  ;;  %350 = vst [vmem:[%s574_s7 + $0x18] sm:$0xff] %v346_v46 }
 0x221   :  { %349 = vst [vmem:[%s574_s7 + $0x10] sm:$0xff] %v345_v47 }

</bundles_post_ra>
